<compile_context>
chip_gen: v6e
topology: v6e:2x2x1
jax: 0.10.0
libtpu: 0.0.40
codegen_flags: <defaults>
</compile_context>

<pallas_src>
import math

import jax
import jax.numpy as jnp
from jax import lax
from jax.experimental import pallas as pl
from jax.experimental.pallas import tpu as pltpu


def _softmax_last(a):
    m = jnp.max(a, axis=-1, keepdims=True)
    e = jnp.exp(a - m)
    return e / jnp.sum(e, axis=-1, keepdims=True)


def _graph_gen_kernel(x_ref, sel_ref, mem_ref, fcw_ref, o_ref):
    # x_ref:   (B*C, N*L)  lane-dense input (all batch elements)
    # sel_ref: (N*L, N)    time-sum block selector, pre-scaled by C^-1/4
    # mem_ref: (C, N)      Graph_Generator.memory, pre-scaled by C^-1/4
    # fcw_ref: SMEM (2,)   Linear(2, 1).weight[0]   (bias dropped: softmax shift-invariant)
    # o_ref:   (B, N, N)   top-k-masked adjacency
    bc = x_ref.shape[0]
    n = sel_ref.shape[1]
    b = o_ref.shape[0]
    c = bc // b

    # ---- time sum for ALL batches as ONE MXU matmul (lane-dense LHS) ----
    # s_all[b*C + c, n] = (sum_l x[b, c, n, l]) * C^-1/4
    s_all = jnp.dot(x_ref[...], sel_ref[...], preferred_element_type=jnp.float32)  # (B*C, N)

    w0 = fcw_ref[0]
    w1 = fcw_ref[1]

    # Constants for the row-wise top-k (hoisted out of the batch loop).
    k_top = int(n * 0.8)
    col2 = lax.broadcasted_iota(jnp.int32, (n, n), 1)   # [j, k] = k
    row2 = lax.broadcasted_iota(jnp.int32, (n, n), 0)   # [j, k] = j
    tie_lo = col2 < row2                                 # column k precedes j on ties

    # Per-batch tail: two tiny (N,C)x(C,N) matmuls + softmaxes + top-k mask.
    # B is small & static, so a static Python loop is cheaper than a grid axis here.
    for bi in range(b):
        s_b = s_all[bi * c:(bi + 1) * c, :]              # (C, N), pre-scaled
        s_nc = s_b.T                                     # (N, C), one small transpose

        # relu(score / sqrt(C)); the scale is already folded into sel/mem.
        a1 = jnp.maximum(
            jnp.dot(s_nc, mem_ref[...], preferred_element_type=jnp.float32), 0.0)
        a2 = jnp.maximum(
            jnp.dot(s_nc, s_b, preferred_element_type=jnp.float32), 0.0)
        a1 = _softmax_last(a1)
        a2 = _softmax_last(a2)

        # Linear(2, 1) on the stacked pair (bias dropped), then row softmax.
        adj = _softmax_last(a1 * w0 + a2 * w1)           # (N, N)

        # ---- top-k row mask, k = int(0.8 * N), fused boolean rank count ----
        # rank(i, j) = #{k : adj[i,k] > adj[i,j]} + #{k < j : adj[i,k] == adj[i,j]}
        # keeps exactly k entries per row, ties broken toward lower column index
        # (matches lax.top_k / typical torch.topk tie order for distinct values).
        gt = adj[:, None, :] > adj[:, :, None]           # (N, N, N) bool
        eq = adj[:, None, :] == adj[:, :, None]
        cnt = gt | (eq & tie_lo[None, :, :])
        rank = jnp.sum(cnt.astype(jnp.float32), axis=-1)  # (N, N)
        keep = rank < float(k_top)

        o_ref[bi] = jnp.where(keep, adj, 0.0).astype(o_ref.dtype)


def graph_generator_apply(x, params):
    # x: (B, C, N, L) -> adjacency (B, N, N)
    # NOTE: torch's `.squeeze()` would drop the batch dim when B == 1; we always keep it.
    b, c, n, l = x.shape
    x2d = x.reshape(b * c, n * l)                        # lane-dense: lanes = N*L

    q = float(c) ** -0.25                                # fold 1/sqrt(C) into sel & memory
    sel = ((jnp.arange(n * l, dtype=jnp.int32)[:, None] // l)
           == jnp.arange(n, dtype=jnp.int32)[None, :]).astype(jnp.float32) * q
    mem_scaled = params["memory"].astype(jnp.float32) * q

    return pl.pallas_call(
        _graph_gen_kernel,
        out_shape=jax.ShapeDtypeStruct((b, n, n), x.dtype),
        in_specs=[
            pl.BlockSpec(memory_space=pltpu.MemorySpace.VMEM),   # x2d
            pl.BlockSpec(memory_space=pltpu.MemorySpace.VMEM),   # sel (constant)
            pl.BlockSpec(memory_space=pltpu.MemorySpace.VMEM),   # memory (pre-scaled)
            pl.BlockSpec(memory_space=pltpu.MemorySpace.SMEM),   # fc weight
        ],
        out_specs=pl.BlockSpec(memory_space=pltpu.MemorySpace.VMEM),
    )(x2d, sel, mem_scaled, params["fc_w"])


def init_params(key, channels, num_nodes):
    k1, k2, k3 = jax.random.split(key, 3)
    bound_mem = math.sqrt(6.0 / (channels + num_nodes))  # xavier_uniform_
    bound_fc = 1.0 / math.sqrt(2.0)                      # torch Linear(2,1) default init
    return {
        "memory": jax.random.uniform(k1, (channels, num_nodes), jnp.float32,
                                     -bound_mem, bound_mem),
        "fc_w": jax.random.uniform(k2, (2,), jnp.float32, -bound_fc, bound_fc),
        # fc_b is kept for module fidelity but never used: a uniform shift of every
        # element of a row before the final row-softmax is a mathematical no-op.
        "fc_b": jax.random.uniform(k3, (1,), jnp.float32, -bound_fc, bound_fc),
    }


def _ref_forward(x, params):
    # Pure-JAX reference mirroring the PyTorch module (including the redundant bias).
    b, c, n, l = x.shape
    s = x.sum(-1)
    a1 = jax.nn.softmax(
        jax.nn.relu(jnp.einsum('bcnl,cm->bnm', x, params["memory"]) / math.sqrt(c)), -1)
    a2 = jax.nn.softmax(
        jax.nn.relu(jnp.einsum('bcn,bcm->bnm', s, s) / math.sqrt(c)), -1)
    adj = jax.nn.softmax(a1 * params["fc_w"][0] + a2 * params["fc_w"][1]
                         + params["fc_b"][0], -1)
    k = int(n * 0.8)
    _, idx = lax.top_k(adj, k)                            # ties -> lower index first
    mask = jax.nn.one_hot(idx, n, dtype=adj.dtype).sum(-2)
    return adj * mask


if __name__ == "__main__":
    B, C, N, L = 2, 8, 16, 16   # batch, channels, num_nodes, seq_len

    key = jax.random.PRNGKey(0)
    pkey, xkey = jax.random.split(key)
    params = init_params(pkey, C, N)
    x = jax.random.normal(xkey, (B, C, N, L), jnp.float32)

    fwd = jax.jit(graph_generator_apply)
    adj = jax.block_until_ready(fwd(x, params))

    assert adj.shape == (B, N, N), adj.shape
    assert bool(jnp.all(jnp.isfinite(adj)))

    # each row keeps exactly k = int(0.8 * N) strictly-positive softmax entries, rest are 0
    k_top = int(N * 0.8)
    nz = jnp.sum((adj > 0).astype(jnp.int32), axis=-1)
    assert bool(jnp.all(nz == k_top)), nz

    # matches the pure-JAX reference implementation of the PyTorch module
    ref = _ref_forward(x, params)
    assert bool(jnp.allclose(adj, ref, atol=1e-5, rtol=1e-5)), float(jnp.max(jnp.abs(adj - ref)))

    print("KERNEL_OK")
</pallas_src>

<mosaic_0001>
module attributes {stable_mosaic.version = 11 : i64} {
  func.func @_graph_gen_kernel(%arg0: memref<16x256xf32, #tpu.memory_space<vmem>>, %arg1: memref<256x16xf32, #tpu.memory_space<vmem>>, %arg2: memref<8x16xf32, #tpu.memory_space<vmem>>, %arg3: memref<2xf32, #tpu.memory_space<smem>>, %arg4: memref<2x16x16xf32, #tpu.memory_space<vmem>>) attributes {dimension_semantics = [], scalar_prefetch = 0 : i64, scratch_operands = 0 : i64, tpu.core_type = #tpu.core_type<tc>} {
    %c0 = arith.constant 0 : index
    %c0_0 = arith.constant 0 : index
    %0 = vector.load %arg0[%c0, %c0_0] : memref<16x256xf32, #tpu.memory_space<vmem>>, vector<16x256xf32>
    %c0_1 = arith.constant 0 : index
    %c0_2 = arith.constant 0 : index
    %1 = vector.load %arg1[%c0_1, %c0_2] : memref<256x16xf32, #tpu.memory_space<vmem>>, vector<256x16xf32>
    %cst = arith.constant dense<0.000000e+00> : vector<16x16xf32>
    %2 = tpu.matmul %0, %1, %cst {dimension_numbers = #tpu.dot_dimension_numbers<[1], [0], [0], [1], [0, 0, 1, 1], [], []>} : vector<16x256xf32>, vector<256x16xf32>, vector<16x16xf32> -> vector<16x16xf32>
    %c0_3 = arith.constant 0 : index
    %3 = memref.load %arg3[%c0_3] : memref<2xf32, #tpu.memory_space<smem>>
    %c1 = arith.constant 1 : index
    %4 = memref.load %arg3[%c1] : memref<2xf32, #tpu.memory_space<smem>>
    %5 = tpu.iota {dimensions = array<i32: 1>} : vector<16x16xi32>
    %6 = tpu.iota {dimensions = array<i32: 0>} : vector<16x16xi32>
    %7 = arith.cmpi slt, %5, %6 : vector<16x16xi32>
    %8 = vector.extract_strided_slice %2 {offsets = [0, 0], sizes = [8, 16], strides = [1, 1]} : vector<16x16xf32> to vector<8x16xf32>
    %9 = tpu.transpose %8, [1, 0] : vector<8x16xf32> -> vector<16x8xf32>
    %c0_4 = arith.constant 0 : index
    %c0_5 = arith.constant 0 : index
    %10 = vector.load %arg2[%c0_4, %c0_5] : memref<8x16xf32, #tpu.memory_space<vmem>>, vector<8x16xf32>
    %cst_6 = arith.constant dense<0.000000e+00> : vector<16x16xf32>
    %11 = tpu.matmul %9, %10, %cst_6 {dimension_numbers = #tpu.dot_dimension_numbers<[1], [0], [0], [1], [0, 0, 1, 1], [], []>} : vector<16x8xf32>, vector<8x16xf32>, vector<16x16xf32> -> vector<16x16xf32>
    %cst_7 = arith.constant 0.000000e+00 : f32
    %12 = vector.broadcast %cst_7 : f32 to vector<16x16xf32>
    %13 = arith.maximumf %11, %12 : vector<16x16xf32>
    %cst_8 = arith.constant dense<0.000000e+00> : vector<16x16xf32>
    %14 = tpu.matmul %9, %8, %cst_8 {dimension_numbers = #tpu.dot_dimension_numbers<[1], [0], [0], [1], [0, 0, 1, 1], [], []>} : vector<16x8xf32>, vector<8x16xf32>, vector<16x16xf32> -> vector<16x16xf32>
    %cst_9 = arith.constant 0.000000e+00 : f32
    %15 = vector.broadcast %cst_9 : f32 to vector<16x16xf32>
    %16 = arith.maximumf %14, %15 : vector<16x16xf32>
    %cst_10 = arith.constant dense<0xFF800000> : vector<16xf32>
    %17 = vector.multi_reduction <maximumf>, %13, %cst_10 [1] : vector<16x16xf32> to vector<16xf32>
    %18 = vector.shape_cast %17 : vector<16xf32> to vector<16x1xf32>
    %19 = vector.broadcast %18 : vector<16x1xf32> to vector<16x16xf32>
    %20 = arith.subf %13, %19 : vector<16x16xf32>
    %21 = math.exp %20 : vector<16x16xf32>
    %cst_11 = arith.constant dense<0.000000e+00> : vector<16xf32>
    %22 = vector.multi_reduction <add>, %21, %cst_11 [1] : vector<16x16xf32> to vector<16xf32>
    %23 = vector.shape_cast %22 : vector<16xf32> to vector<16x1xf32>
    %24 = vector.broadcast %23 : vector<16x1xf32> to vector<16x16xf32>
    %25 = arith.divf %21, %24 : vector<16x16xf32>
    %cst_12 = arith.constant dense<0xFF800000> : vector<16xf32>
    %26 = vector.multi_reduction <maximumf>, %16, %cst_12 [1] : vector<16x16xf32> to vector<16xf32>
    %27 = vector.shape_cast %26 : vector<16xf32> to vector<16x1xf32>
    %28 = vector.broadcast %27 : vector<16x1xf32> to vector<16x16xf32>
    %29 = arith.subf %16, %28 : vector<16x16xf32>
    %30 = math.exp %29 : vector<16x16xf32>
    %cst_13 = arith.constant dense<0.000000e+00> : vector<16xf32>
    %31 = vector.multi_reduction <add>, %30, %cst_13 [1] : vector<16x16xf32> to vector<16xf32>
    %32 = vector.shape_cast %31 : vector<16xf32> to vector<16x1xf32>
    %33 = vector.broadcast %32 : vector<16x1xf32> to vector<16x16xf32>
    %34 = arith.divf %30, %33 : vector<16x16xf32>
    %35 = vector.broadcast %3 : f32 to vector<16x16xf32>
    %36 = arith.mulf %25, %35 : vector<16x16xf32>
    %37 = vector.broadcast %4 : f32 to vector<16x16xf32>
    %38 = arith.mulf %34, %37 : vector<16x16xf32>
    %39 = arith.addf %36, %38 : vector<16x16xf32>
    %cst_14 = arith.constant dense<0xFF800000> : vector<16xf32>
    %40 = vector.multi_reduction <maximumf>, %39, %cst_14 [1] : vector<16x16xf32> to vector<16xf32>
    %41 = vector.shape_cast %40 : vector<16xf32> to vector<16x1xf32>
    %42 = vector.broadcast %41 : vector<16x1xf32> to vector<16x16xf32>
    %43 = arith.subf %39, %42 : vector<16x16xf32>
    %44 = math.exp %43 : vector<16x16xf32>
    %cst_15 = arith.constant dense<0.000000e+00> : vector<16xf32>
    %45 = vector.multi_reduction <add>, %44, %cst_15 [1] : vector<16x16xf32> to vector<16xf32>
    %46 = vector.shape_cast %45 : vector<16xf32> to vector<16x1xf32>
    %47 = vector.broadcast %46 : vector<16x1xf32> to vector<16x16xf32>
    %48 = arith.divf %44, %47 : vector<16x16xf32>
    %49 = vector.shape_cast %48 : vector<16x16xf32> to vector<16x1x16xf32>
    %50 = vector.shape_cast %48 : vector<16x16xf32> to vector<16x16x1xf32>
    %51 = vector.broadcast %49 : vector<16x1x16xf32> to vector<16x16x16xf32>
    %52 = vector.broadcast %50 : vector<16x16x1xf32> to vector<16x16x16xf32>
    %53 = arith.cmpf ogt, %51, %52 : vector<16x16x16xf32>
    %54 = vector.shape_cast %48 : vector<16x16xf32> to vector<16x1x16xf32>
    %55 = vector.shape_cast %48 : vector<16x16xf32> to vector<16x16x1xf32>
    %56 = vector.broadcast %54 : vector<16x1x16xf32> to vector<16x16x16xf32>
    %57 = vector.broadcast %55 : vector<16x16x1xf32> to vector<16x16x16xf32>
    %58 = arith.cmpf oeq, %56, %57 : vector<16x16x16xf32>
    %59 = vector.shape_cast %7 : vector<16x16xi1> to vector<1x16x16xi1>
    %60 = vector.broadcast %59 : vector<1x16x16xi1> to vector<16x16x16xi1>
    %61 = arith.andi %58, %60 : vector<16x16x16xi1>
    %62 = arith.ori %53, %61 : vector<16x16x16xi1>
    %63 = arith.extui %62 : vector<16x16x16xi1> to vector<16x16x16xi32>
    %64 = arith.sitofp %63 : vector<16x16x16xi32> to vector<16x16x16xf32>
    %cst_16 = arith.constant dense<0.000000e+00> : vector<16x16xf32>
    %65 = vector.multi_reduction <add>, %64, %cst_16 [2] : vector<16x16x16xf32> to vector<16x16xf32>
    %cst_17 = arith.constant 1.200000e+01 : f32
    %66 = vector.broadcast %cst_17 : f32 to vector<16x16xf32>
    %67 = arith.cmpf olt, %65, %66 : vector<16x16xf32>
    %cst_18 = arith.constant 0.000000e+00 : f32
    %68 = vector.broadcast %cst_18 : f32 to vector<16x16xf32>
    %69 = arith.select %67, %48, %68 : vector<16x16xi1>, vector<16x16xf32>
    %c0_19 = arith.constant 0 : index
    %c0_20 = arith.constant 0 : index
    %c0_21 = arith.constant 0 : index
    %70 = vector.load %arg4[%c0_19, %c0_20, %c0_21] : memref<2x16x16xf32, #tpu.memory_space<vmem>>, vector<1x16x16xf32>
    %71 = vector.shape_cast %70 : vector<1x16x16xf32> to vector<16x16xf32>
    %72 = vector.shape_cast %69 : vector<16x16xf32> to vector<1x16x16xf32>
    tpu.vector_store %arg4[%c0_19, %c0_20, %c0_21], %72 {strides = array<i32>} : memref<2x16x16xf32, #tpu.memory_space<vmem>>, vector<1x16x16xf32>,
    %73 = vector.extract_strided_slice %2 {offsets = [8, 0], sizes = [8, 16], strides = [1, 1]} : vector<16x16xf32> to vector<8x16xf32>
    %74 = tpu.transpose %73, [1, 0] : vector<8x16xf32> -> vector<16x8xf32>
    %c0_22 = arith.constant 0 : index
    %c0_23 = arith.constant 0 : index
    %75 = vector.load %arg2[%c0_22, %c0_23] : memref<8x16xf32, #tpu.memory_space<vmem>>, vector<8x16xf32>
    %cst_24 = arith.constant dense<0.000000e+00> : vector<16x16xf32>
    %76 = tpu.matmul %74, %75, %cst_24 {dimension_numbers = #tpu.dot_dimension_numbers<[1], [0], [0], [1], [0, 0, 1, 1], [], []>} : vector<16x8xf32>, vector<8x16xf32>, vector<16x16xf32> -> vector<16x16xf32>
    %cst_25 = arith.constant 0.000000e+00 : f32
    %77 = vector.broadcast %cst_25 : f32 to vector<16x16xf32>
    %78 = arith.maximumf %76, %77 : vector<16x16xf32>
    %cst_26 = arith.constant dense<0.000000e+00> : vector<16x16xf32>
    %79 = tpu.matmul %74, %73, %cst_26 {dimension_numbers = #tpu.dot_dimension_numbers<[1], [0], [0], [1], [0, 0, 1, 1], [], []>} : vector<16x8xf32>, vector<8x16xf32>, vector<16x16xf32> -> vector<16x16xf32>
    %cst_27 = arith.constant 0.000000e+00 : f32
    %80 = vector.broadcast %cst_27 : f32 to vector<16x16xf32>
    %81 = arith.maximumf %79, %80 : vector<16x16xf32>
    %cst_28 = arith.constant dense<0xFF800000> : vector<16xf32>
    %82 = vector.multi_reduction <maximumf>, %78, %cst_28 [1] : vector<16x16xf32> to vector<16xf32>
    %83 = vector.shape_cast %82 : vector<16xf32> to vector<16x1xf32>
    %84 = vector.broadcast %83 : vector<16x1xf32> to vector<16x16xf32>
    %85 = arith.subf %78, %84 : vector<16x16xf32>
    %86 = math.exp %85 : vector<16x16xf32>
    %cst_29 = arith.constant dense<0.000000e+00> : vector<16xf32>
    %87 = vector.multi_reduction <add>, %86, %cst_29 [1] : vector<16x16xf32> to vector<16xf32>
    %88 = vector.shape_cast %87 : vector<16xf32> to vector<16x1xf32>
    %89 = vector.broadcast %88 : vector<16x1xf32> to vector<16x16xf32>
    %90 = arith.divf %86, %89 : vector<16x16xf32>
    %cst_30 = arith.constant dense<0xFF800000> : vector<16xf32>
    %91 = vector.multi_reduction <maximumf>, %81, %cst_30 [1] : vector<16x16xf32> to vector<16xf32>
    %92 = vector.shape_cast %91 : vector<16xf32> to vector<16x1xf32>
    %93 = vector.broadcast %92 : vector<16x1xf32> to vector<16x16xf32>
    %94 = arith.subf %81, %93 : vector<16x16xf32>
    %95 = math.exp %94 : vector<16x16xf32>
    %cst_31 = arith.constant dense<0.000000e+00> : vector<16xf32>
    %96 = vector.multi_reduction <add>, %95, %cst_31 [1] : vector<16x16xf32> to vector<16xf32>
    %97 = vector.shape_cast %96 : vector<16xf32> to vector<16x1xf32>
    %98 = vector.broadcast %97 : vector<16x1xf32> to vector<16x16xf32>
    %99 = arith.divf %95, %98 : vector<16x16xf32>
    %100 = vector.broadcast %3 : f32 to vector<16x16xf32>
    %101 = arith.mulf %90, %100 : vector<16x16xf32>
    %102 = vector.broadcast %4 : f32 to vector<16x16xf32>
    %103 = arith.mulf %99, %102 : vector<16x16xf32>
    %104 = arith.addf %101, %103 : vector<16x16xf32>
    %cst_32 = arith.constant dense<0xFF800000> : vector<16xf32>
    %105 = vector.multi_reduction <maximumf>, %104, %cst_32 [1] : vector<16x16xf32> to vector<16xf32>
    %106 = vector.shape_cast %105 : vector<16xf32> to vector<16x1xf32>
    %107 = vector.broadcast %106 : vector<16x1xf32> to vector<16x16xf32>
    %108 = arith.subf %104, %107 : vector<16x16xf32>
    %109 = math.exp %108 : vector<16x16xf32>
    %cst_33 = arith.constant dense<0.000000e+00> : vector<16xf32>
    %110 = vector.multi_reduction <add>, %109, %cst_33 [1] : vector<16x16xf32> to vector<16xf32>
    %111 = vector.shape_cast %110 : vector<16xf32> to vector<16x1xf32>
    %112 = vector.broadcast %111 : vector<16x1xf32> to vector<16x16xf32>
    %113 = arith.divf %109, %112 : vector<16x16xf32>
    %114 = vector.shape_cast %113 : vector<16x16xf32> to vector<16x1x16xf32>
    %115 = vector.shape_cast %113 : vector<16x16xf32> to vector<16x16x1xf32>
    %116 = vector.broadcast %114 : vector<16x1x16xf32> to vector<16x16x16xf32>
    %117 = vector.broadcast %115 : vector<16x16x1xf32> to vector<16x16x16xf32>
    %118 = arith.cmpf ogt, %116, %117 : vector<16x16x16xf32>
    %119 = vector.shape_cast %113 : vector<16x16xf32> to vector<16x1x16xf32>
    %120 = vector.shape_cast %113 : vector<16x16xf32> to vector<16x16x1xf32>
    %121 = vector.broadcast %119 : vector<16x1x16xf32> to vector<16x16x16xf32>
    %122 = vector.broadcast %120 : vector<16x16x1xf32> to vector<16x16x16xf32>
    %123 = arith.cmpf oeq, %121, %122 : vector<16x16x16xf32>
    %124 = vector.shape_cast %7 : vector<16x16xi1> to vector<1x16x16xi1>
    %125 = vector.broadcast %124 : vector<1x16x16xi1> to vector<16x16x16xi1>
    %126 = arith.andi %123, %125 : vector<16x16x16xi1>
    %127 = arith.ori %118, %126 : vector<16x16x16xi1>
    %128 = arith.extui %127 : vector<16x16x16xi1> to vector<16x16x16xi32>
    %129 = arith.sitofp %128 : vector<16x16x16xi32> to vector<16x16x16xf32>
    %cst_34 = arith.constant dense<0.000000e+00> : vector<16x16xf32>
    %130 = vector.multi_reduction <add>, %129, %cst_34 [2] : vector<16x16x16xf32> to vector<16x16xf32>
    %cst_35 = arith.constant 1.200000e+01 : f32
    %131 = vector.broadcast %cst_35 : f32 to vector<16x16xf32>
    %132 = arith.cmpf olt, %130, %131 : vector<16x16xf32>
    %cst_36 = arith.constant 0.000000e+00 : f32
    %133 = vector.broadcast %cst_36 : f32 to vector<16x16xf32>
    %134 = arith.select %132, %113, %133 : vector<16x16xi1>, vector<16x16xf32>
    %c1_37 = arith.constant 1 : index
    %c0_38 = arith.constant 0 : index
    %c0_39 = arith.constant 0 : index
    %135 = vector.load %arg4[%c1_37, %c0_38, %c0_39] : memref<2x16x16xf32, #tpu.memory_space<vmem>>, vector<1x16x16xf32>
    %136 = vector.shape_cast %135 : vector<1x16x16xf32> to vector<16x16xf32>
    %137 = vector.shape_cast %134 : vector<16x16xf32> to vector<1x16x16xf32>
    tpu.vector_store %arg4[%c1_37, %c0_38, %c0_39], %137 {strides = array<i32>} : memref<2x16x16xf32, #tpu.memory_space<vmem>>, vector<1x16x16xf32>,
    return
  }
}

</mosaic_0001>

<bundles_post_ra>
// kernel: graph_generator_apply.1
= control target key start
LH: loop header
LB: loop body
LE: loop exit
PB: predicated region body
PF: predicated region fallthrough
CT: control target
= control target key end

     0   :  { %9 = vsyncpa [#allocation4], 0  ;;  %s5070_s0 = inlined_call_operand.vmem [shape: f32[16,256], index: 0, kind: input, shape index: {}]   ;;  %s5071_s1 = inlined_call_operand.vmem [shape: f32[256,16], index: 1, kind: input, shape index: {}]   ;;  %s5072_s2 = inlined_call_operand.vmem [shape: f32[8,16], index: 2, kind: input, shape index: {}]   ;;  %s5073_s3 = inlined_call_operand.vmem [shape: f32[2], index: 3, kind: input, shape index: {}]   ;;  %s5074_s4 = inlined_call_operand.hbm [shape: f32[2,16,16], index: 4, kind: output, shape index: {}]  }
   0x1   :  { %10 = vsyncpa [#allocation3], 0  ;;  %s23_s17 = sshll.u32 %s5073_s3, 4  ;;  %s24_s17 = int_to_ptr.vmem [resolvable:$true] %s23_s17 }
   0x2   :  { %s3328_s18 = scalar_lea.vmem %s24_s17, 16  ;;  %p3333_p1 = scmp.lt.s32.totalorder %s24_s17, %s24_s17 }
   0x3   :  { %p3329_p0 = scmp.ne.s32.totalorder %s24_s17, %s3328_s18  ;;  %p3334_p2 = scmp.lt.s32.totalorder %s3328_s18, %s3328_s18 }
   0x5   :  { %p3335_p3 = por %p3334_p2, %p3333_p1 }
   0x7   :  { %p3336_p4 = pnand %p3335_p3, %p3329_p0 }
   0x9   :  { %3339 = shalt.err (!%p3336_p4)
}
   0xa   :  { %s3364_s19 = smov [#allocation2]  }
   0xb   :  { %26 = dma.vmem_to_smem %s24_s17, 16, %s3364_s19, [#allocation4]  }
   0xc   :  { %3360 = dma.done.wait [#allocation4], 16  }
   0xd   :  { %3361 = vsyncadd [#allocation4], 4294967280 }
   0xe   :  { %30 = sfence }
   0xf   :  { %v66_v0 = vld [vmem:[%s5071_s1 + $0xf8] sm:$0xff]  ;;  %v65_v2 = vld [vmem:[%s5071_s1 + $0xf0] sm:$0xff]  ;;  %v64_v4 = vld [vmem:[%s5071_s1 + $0xe8] sm:$0xff]  ;;  %vm184_vm0 = vcmask 64512   ;;  %vm5097_vm1 = vcmask 130048   ;;  %s3368_s12 = smov [#allocation5]  }
  0x10   :  { %v50_v1 = vld [vmem:[%s5071_s1 + $0x78] sm:$0xff]  ;;  %3201 = vmatprep.subr.mxu0 %v66_v0  ;;  %v49_v3 = vld [vmem:[%s5071_s1 + $0x70] sm:$0xff]  ;;  %v48_v5 = vld [vmem:[%s5071_s1 + $0x68] sm:$0xff]  ;;  %s3116_s13 = sshll.u32 %s3368_s12, 4  ;;  %s3117_s13 = int_to_ptr.vmem [resolvable:$true] %s3116_s13 }
  0x11   :  { %3202 = vmatpush3.msra.mxu0 %v50_v1  ;;  %v63_v6 = vld [vmem:[%s5071_s1 + $0xe0] sm:$0xff]  ;;  %v62_v8 = vld [vmem:[%s5071_s1 + $0xd8] sm:$0xff]  ;;  %v61_v10 = vld [vmem:[%s5071_s1 + $0xd0] sm:$0xff]  ;;  %s3340_s14 = scalar_lea.vmem %s3117_s13, 512  ;;  %p3345_p6 = scmp.lt.s32.totalorder %s3117_s13, %s3117_s13 }
  0x12   :  { %3203 = vmatprep.subr.mxu0 %v65_v2  ;;  %v47_v7 = vld [vmem:[%s5071_s1 + $0x60] sm:$0xff]  ;;  %v46_v9 = vld [vmem:[%s5071_s1 + $0x58] sm:$0xff]  ;;  %v45_v11 = vld [vmem:[%s5071_s1 + $0x50] sm:$0xff]  ;;  %p3341_p5 = scmp.ne.s32.totalorder %s3117_s13, %s3340_s14  ;;  %p3346_p7 = scmp.lt.s32.totalorder %s3340_s14, %s3340_s14 }
  0x13   :  { %3204 = vmatpush3.msra.mxu0 %v49_v3  ;;  %v60_v12 = vld [vmem:[%s5071_s1 + $0xc8] sm:$0xff]  ;;  %v59_v15 = vld [vmem:[%s5071_s1 + $0xc0] sm:$0xff]  ;;  %v58_v17 = vld [vmem:[%s5071_s1 + $0xb8] sm:$0xff] }
  0x14   :  { %3205 = vmatprep.subr.mxu0 %v64_v4  ;;  %v32_v13 = vld [vmem:[%s5070_s0 + $0x8] sm:$0xff]  ;;  %v43_v16 = vld [vmem:[%s5071_s1 + $0x40] sm:$0xff]  ;;  %v42_v18 = vld [vmem:[%s5071_s1 + $0x38] sm:$0xff]  ;;  %p3347_p8 = por %p3346_p7, %p3345_p6 }
  0x15   :  { %3206 = vmatpush3.msra.mxu0 %v48_v5  ;;  %v44_v14 = vld [vmem:[%s5071_s1 + $0x48] sm:$0xff]  ;;  %131 = vmatprep.mubr.f32.mxu0 %v32_v13  ;;  %v57_v19 = vld [vmem:[%s5071_s1 + $0xb0] sm:$0xff]  ;;  %v55_v23 = vld [vmem:[%s5071_s1 + $0xa0] sm:$0xff] }
  0x16   :  { %3207 = vmatprep.subr.mxu0 %v63_v6  ;;  %v41_v20 = vld [vmem:[%s5071_s1 + $0x30] sm:$0xff]  ;;  %v56_v21 = vld [vmem:[%s5071_s1 + $0xa8] sm:$0xff]  ;;  %v39_v24 = vld [vmem:[%s5071_s1 + $0x20] sm:$0xff]  ;;  %p3348_p9 = pnand %p3347_p8, %p3341_p5 }
  0x17   :  { %3208 = vmatpush3.msra.mxu0 %v47_v7  ;;  %v40_v22 = vld [vmem:[%s5071_s1 + $0x28] sm:$0xff]  ;;  %v54_v25 = vld [vmem:[%s5071_s1 + $0x98] sm:$0xff]  ;;  %v53_v27 = vld [vmem:[%s5071_s1 + $0x90] sm:$0xff] }
  0x18   :  { %3209 = vmatprep.subr.mxu0 %v62_v8  ;;  %v38_v26 = vld [vmem:[%s5071_s1 + $0x18] sm:$0xff]  ;;  %v37_v28 = vld [vmem:[%s5071_s1 + $0x10] sm:$0xff]  ;;  %v52_v29 = vld [vmem:[%s5071_s1 + $0x88] sm:$0xff] }
  0x19   :  { %3210 = vmatpush3.msra.mxu0 %v46_v9  ;;  %v36_v30 = vld [vmem:[%s5071_s1 + $0x8] sm:$0xff]  ;;  %v51_v31 = vld [vmem:[%s5071_s1 + $0x80] sm:$0xff]  ;;  %v34_v34 = vld [vmem:[%s5070_s0 + $0x18] sm:$0xff] }
  0x1a   :  { %3211 = vmatprep.subr.mxu0 %v61_v10  ;;  %v35_v32 = vld [vmem:[%s5071_s1] sm:$0xff]  ;;  %v33_v35 = vld [vmem:[%s5070_s0 + $0x10] sm:$0xff] }
  0x1b   :  { %3212 = vmatpush3.msra.mxu0 %v45_v11  ;;  %v31_v33 = vld [vmem:[%s5070_s0] sm:$0xff]  ;;  %s3128_s0 = sld [smem:[#allocation2 + $0x1]] }
  0x1c   :  { %3213 = vmatprep.subr.mxu0 %v60_v12  ;;  %v183_v36 = vld [vmem:[%s5072_s2] sm:$0xff]  ;;  %s142_s2 = sld [smem:[#allocation2]] }
  0x1d   :  { %3214 = vmatpush3.msra.mxu0 %v44_v14  ;;  %3251 = vmatprep.subr.mxu1 %v183_v36 }
  0x1e   :  { %3215 = vmatprep.subr.mxu0 %v59_v15  ;;  %3252 = vmatpush3.msra.mxu1 %v183_v36 }
  0x1f   :  { %3216 = vmatpush3.msra.mxu0 %v43_v16 }
  0x20   :  { %3217 = vmatprep.subr.mxu0 %v58_v17 }
  0x21   :  { %3218 = vmatpush3.msra.mxu0 %v42_v18 }
  0x22   :  { %3219 = vmatprep.subr.mxu0 %v57_v19 }
  0x23   :  { %3220 = vmatpush3.msra.mxu0 %v41_v20 }
  0x24   :  { %3221 = vmatprep.subr.mxu0 %v56_v21 }
  0x25   :  { %3222 = vmatpush3.msra.mxu0 %v40_v22 }
  0x26   :  { %3223 = vmatprep.subr.mxu0 %v55_v23 }
  0x27   :  { %3224 = vmatpush3.msra.mxu0 %v39_v24 }
  0x28   :  { %3225 = vmatprep.subr.mxu0 %v54_v25 }
  0x29   :  { %3226 = vmatpush3.msra.mxu0 %v38_v26 }
  0x2a   :  { %3227 = vmatprep.subr.mxu0 %v53_v27 }
  0x2b   :  { %3228 = vmatpush3.msra.mxu0 %v37_v28 }
  0x2c   :  { %3229 = vmatprep.subr.mxu0 %v52_v29 }
  0x2d   :  { %3230 = vmatpush3.msra.mxu0 %v36_v30 }
  0x2e   :  { %3231 = vmatprep.subr.mxu0 %v51_v31 }
  0x2f   :  { %3232 = vmatpush3.msra.mxu0 %v35_v32 }
  0x30   :  { %132 = vmatmul.mubr.f32.vlgmr.msra.gmra.mxu0 %v31_v33 }
  0x31   :  { %136 = vmatprep.mubr.f32.mxu0 %v34_v34 }
  0x34   :  { %137 = vmatmul.mubr.f32.gmra.mxu0 %v33_v35 }
  0xf0   :  { %v3233_v37 = vpop.f32.mrf.mxu0 }
  0xf2   :  { %v3234_v38 = vpop.f32.mrf.mxu0 }
  0xf3   :  { %v3235_v39 = vadd.f32 %v3234_v38, %v3233_v37 }
  0xf4   :  { %v3236_v40 = vpop.f32.mrf.mxu0 }
  0xf5   :  { %151 = vxpose.xlu0.b32.start.end [1/1] (short) (narrow) %v3235_v39, 16  ;;  %3256 = vmatprep.subr.mxu1 %v3235_v39 }
  0xf6   :  { %v3237_v41 = vpop.f32.mrf.mxu0 }
  0xf7   :  { %v3238_v42 = vadd.f32 %v3237_v41, %v3236_v40 }
  0xf9   :  { %1639 = vxpose.xlu1.b32.start.end [1/1] (short) (narrow) %v3238_v42, 16 }
 0x171   :  { %v167_v43 = vpop.trf.xlu0 }
 0x172   :  { %3253 = vmatprep.mubr.msk.f32.mxu1 %vm184_vm0, %v167_v43 }
 0x175   :  { %v168_v44 = vpop.trf.xlu0  ;;  %v1655_v45 = vpop.trf.xlu1 }
 0x176   :  { %3254 = vmatmul.mubr.msk.f32.vlgmr.msra.gmra.mxu1 %vm184_vm0, %v168_v44 }
 0x177   :  { %3257 = vmatpush3.msra.mxu1 %v3235_v39  ;;  %3258 = vmatprep.mubr.msk.f32.mxu1 %vm184_vm0, %v167_v43 }
 0x178   :  { %3261 = vmatprep.subr.mxu1 %v183_v36 }
 0x179   :  { %v1656_v46 = vpop.trf.xlu1 }
 0x17a   :  { %3259 = vmatmul.mubr.msk.f32.vlgmr.msra.gmra.mxu1 %vm184_vm0, %v168_v44 }
 0x17b   :  { %3262 = vmatpush3.msra.mxu1 %v183_v36  ;;  %3263 = vmatprep.mubr.msk.f32.mxu1 %vm184_vm0, %v1655_v45 }
 0x17c   :  { %3266 = vmatprep.subr.mxu1 %v3238_v42 }
 0x17e   :  { %3264 = vmatmul.mubr.msk.f32.vlgmr.msra.gmra.mxu1 %vm184_vm0, %v1656_v46 }
 0x17f   :  { %3267 = vmatpush3.msra.mxu1 %v3238_v42  ;;  %3268 = vmatprep.mubr.msk.f32.mxu1 %vm184_vm0, %v1655_v45 }
 0x182   :  { %3269 = vmatmul.mubr.msk.f32.vlgmr.msra.gmra.mxu1 %vm184_vm0, %v1656_v46 }
 0x236   :  { %v3255_v47 = vpop.f32.mrf.mxu1 }
 0x237   :  { %v267_v48 = vmax.f32 %v3255_v47, 0.0 }
 0x238   :  { %v257_v49 = vpop.f32.mrf.mxu1 }
 0x239   :  { %v266_v50 = vmax.f32 %v257_v49, 0.0  ;;  %v349_v51 = vsel %vm5097_vm1, %v267_v48, -inf }
 0x23a   :  { %350 = vmax.xlane.f32.xlu1 %v349_v51  ;;  %v3260_v52 = vpop.f32.mrf.mxu1 }
 0x23b   :  { %v344_v53 = vmax.f32 %v3260_v52, 0.0  ;;  %v346_v54 = vsel %vm5097_vm1, %v266_v50, -inf }
 0x23c   :  { %347 = vmax.xlane.f32.xlu0 %v346_v54  ;;  %v334_v55 = vpop.f32.mrf.mxu1 }
 0x23d   :  { %v343_v56 = vmax.f32 %v334_v55, 0.0  ;;  %v371_v57 = vsel %vm5097_vm1, %v344_v53, -inf }
 0x23e   :  { %372 = vmax.xlane.f32.xlu1 %v371_v57  ;;  %v3265_v58 = vpop.f32.mrf.mxu1 }
 0x23f   :  { %v1754_v59 = vmax.f32 %v3265_v58, 0.0  ;;  %v368_v60 = vsel %vm5097_vm1, %v343_v56, -inf }
 0x240   :  { %369 = vmax.xlane.f32.xlu0 %v368_v60  ;;  %v1744_v61 = vpop.f32.mrf.mxu1 }
 0x241   :  { %v1835_v62 = vsel %vm5097_vm1, %v1754_v59, -inf  ;;  %v1753_v63 = vmax.f32 %v1744_v61, 0.0 }
 0x242   :  { %1836 = vmax.xlane.f32.xlu1 %v1835_v62  ;;  %v3270_v0 = vpop.f32.mrf.mxu1 }
 0x243   :  { %v1831_v1 = vmax.f32 %v3270_v0, 0.0  ;;  %v1832_v2 = vsel %vm5097_vm1, %v1753_v63, -inf }
 0x244   :  { %v1821_v3 = vpop.f32.mrf.mxu1 }
 0x245   :  { %v1830_v4 = vmax.f32 %v1821_v3, 0.0  ;;  %v1857_v5 = vsel %vm5097_vm1, %v1831_v1, -inf }
 0x246   :  { %1833 = vmax.xlane.f32.xlu1 %v1832_v2 }
 0x247   :  { %v1854_v6 = vsel %vm5097_vm1, %v1830_v4, -inf }
 0x24a   :  { %1858 = vmax.xlane.f32.xlu1 %v1857_v5 }
 0x24e   :  { %1855 = vmax.xlane.f32.xlu1 %v1854_v6 }
 0x2c3   :  { %v351_v7 = vpop.xlane.xlu1 %350 }
 0x2c4   :  { %v353_v8 = vsub.f32 %v267_v48, %v351_v7 }
 0x2c5   :  { %v348_v9 = vpop.xlane.xlu0 %347 }
 0x2c6   :  { %v356_v10 = vmul.f32 1.442695, %v353_v8  ;;  %v352_v11 = vsub.f32 %v266_v50, %v348_v9 }
 0x2c7   :  { %v373_v12 = vpop.xlane.xlu1 %372 }
 0x2c8   :  { %3280 = vpow2.f32 %v356_v10  ;;  %v354_v13 = vmul.f32 1.442695, %v352_v11  ;;  %v375_v14 = vsub.f32 %v344_v53, %v373_v12 }
 0x2c9   :  { %v370_v15 = vpop.xlane.xlu0 %369 }
 0x2ca   :  { %3282 = vpow2.f32 %v354_v13  ;;  %v378_v16 = vmul.f32 1.442695, %v375_v14  ;;  %v374_v17 = vsub.f32 %v343_v56, %v370_v15 }
 0x2cb   :  { %v1837_v18 = vpop.xlane.xlu1 %1836 }
 0x2cc   :  { %v376_v19 = vmul.f32 1.442695, %v374_v17  ;;  %v1839_v20 = vsub.f32 %v1754_v59, %v1837_v18  ;;  %3284 = vpow2.f32 %v378_v16  ;;  %v393_v59 = vstv %s3128_s0 }
 0x2ce   :  { %3286 = vpow2.f32 %v376_v19  ;;  %v1842_v21 = vmul.f32 1.442695, %v1839_v20 }
 0x2cf   :  { %v1834_v22 = vpop.xlane.xlu1 %1833 }
 0x2d0   :  { %3288 = vpow2.f32 %v1842_v21  ;;  %v1838_v23 = vsub.f32 %v1753_v63, %v1834_v22  ;;  %v390_v63 = vstv %s142_s2 }
 0x2d2   :  { %v1840_v24 = vmul.f32 1.442695, %v1838_v23 }
 0x2d3   :  { %v1859_v25 = vpop.xlane.xlu1 %1858 }
 0x2d4   :  { %3290 = vpow2.f32 %v1840_v24  ;;  %v1861_v26 = vsub.f32 %v1831_v1, %v1859_v25 }
 0x2d5   :  { %v3281_v27 = vpop.eup %3280 }
 0x2d6   :  { %v1864_v28 = vmul.f32 1.442695, %v1861_v26  ;;  %v361_v29 = vsel %vm5097_vm1, %v3281_v27, 0.0 }
 0x2d7   :  { %v3283_v30 = vpop.eup %3282  ;;  %362 = vadd.xlane.f32.xlu1 %v361_v29  ;;  %v1856_v31 = vpop.xlane.xlu1 %1855 }
 0x2d8   :  { %3292 = vpow2.f32 %v1864_v28  ;;  %v1860_v32 = vsub.f32 %v1830_v4, %v1856_v31  ;;  %v358_v35 = vsel %vm5097_vm1, %v3283_v30, 0.0 }
 0x2d9   :  { %v3285_v33 = vpop.eup %3284 }
 0x2da   :  { %v1862_v34 = vmul.f32 1.442695, %v1860_v32  ;;  %v383_v39 = vsel %vm5097_vm1, %v3285_v33, 0.0 }
 0x2db   :  { %v3287_v36 = vpop.eup %3286  ;;  %359 = vadd.xlane.f32.xlu1 %v358_v35 }
 0x2dc   :  { %3294 = vpow2.f32 %v1862_v34  ;;  %v380_v37 = vsel %vm5097_vm1, %v3287_v36, 0.0 }
 0x2dd   :  { %v3289_v38 = vpop.eup %3288  ;;  %381 = vadd.xlane.f32.xlu0 %v380_v37 }
 0x2de   :  { %v1847_v40 = vsel %vm5097_vm1, %v3289_v38, 0.0 }
 0x2df   :  { %384 = vadd.xlane.f32.xlu1 %v383_v39 }
 0x2e1   :  { %v3291_v41 = vpop.eup %3290  ;;  %1848 = vadd.xlane.f32.xlu0 %v1847_v40 }
 0x2e2   :  { %v1844_v42 = vsel %vm5097_vm1, %v3291_v41, 0.0 }
 0x2e3   :  { %1845 = vadd.xlane.f32.xlu1 %v1844_v42 }
 0x2e5   :  { %v3293_v43 = vpop.eup %3292 }
 0x2e6   :  { %v1869_v44 = vsel %vm5097_vm1, %v3293_v43, 0.0 }
 0x2e7   :  { %1870 = vadd.xlane.f32.xlu1 %v1869_v44 }
 0x2e9   :  { %v3295_v45 = vpop.eup %3294 }
 0x2ea   :  { %v1866_v46 = vsel %vm5097_vm1, %v3295_v45, 0.0 }
 0x2eb   :  { %1867 = vadd.xlane.f32.xlu0 %v1866_v46 }
 0x360   :  { %v363_v47 = vpop.xlane.xlu1 %362 }
 0x361   :  { %3296 = vrcp.f32 %v363_v47  ;;  %v5075_v47 = vlaneseq }
 0x364   :  { %v360_v48 = vpop.xlane.xlu1 %359 }
 0x365   :  { %3298 = vrcp.f32 %v360_v48  ;;  %v3365_v48 = vmov 1966171168  }
 0x366   :  { %v382_v49 = vpop.xlane.xlu0 %381 }
 0x367   :  { %3300 = vrcp.f32 %v382_v49  ;;  %v424_v49 = vunpack.c.l.s4 %v3365_v48 }
 0x368   :  { %v385_v50 = vpop.xlane.xlu1 %384 }
 0x369   :  { %3302 = vrcp.f32 %v385_v50 }
 0x36a   :  { %v1849_v51 = vpop.xlane.xlu0 %1848 }
 0x36b   :  { %3304 = vrcp.f32 %v1849_v51  ;;  %v3549_v51 = vshrl.u32 %v5075_v47, 7 }
 0x36c   :  { %v1846_v52 = vpop.xlane.xlu1 %1845 }
 0x36d   :  { %3306 = vrcp.f32 %v1846_v52  ;;  %5102 = vst [vmem:[#allocation8_spill] sm:$0xff] %v3549_v51  ;;  %v425_v52 = vunpack.c.0.s8 %v424_v49 }
 0x36e   :  { %v3297_v54 = vpop.eup %3296 }
 0x36f   :  { %v367_v61 = vmul.f32 %v3297_v54, %v3281_v27 }
 0x370   :  { %v1871_v53 = vpop.xlane.xlu1 %1870 }
 0x371   :  { %3308 = vrcp.f32 %v1871_v53  ;;  %v392_v4 = vmul.f32 %v390_v63, %v367_v61  ;;  %v3568_v61 = vsub.s32 1, %v3549_v51 }
 0x372   :  { %v3299_v55 = vpop.eup %3298 }
 0x373   :  { %v365_v56 = vmul.f32 %v3299_v55, %v3283_v30 }
 0x374   :  { %v3301_v57 = vpop.eup %3300  ;;  %v1868_v58 = vpop.xlane.xlu0 %1867 }
 0x375   :  { %3310 = vrcp.f32 %v1868_v58  ;;  %v387_v60 = vmul.f32 %v3301_v57, %v3287_v36  ;;  %v391_v0 = vmul.f32 %v390_v63, %v365_v56  ;;  %v3554_v57 = vsub.s32 0, %v3549_v51 }
 0x376   :  { %v3303_v62 = vpop.eup %3302 }
 0x377   :  { %v394_v1 = vmul.f32 %v393_v59, %v387_v60  ;;  %v389_v2 = vmul.f32 %v3303_v62, %v3285_v33 }
 0x378   :  { %v3305_v6 = vpop.eup %3304 }
 0x379   :  { %v396_v3 = vadd.f32 %v394_v1, %v391_v0  ;;  %v395_v5 = vmul.f32 %v393_v59, %v389_v2  ;;  %v1853_v11 = vmul.f32 %v3305_v6, %v3289_v38  ;;  %v3586_v6 = vsub.s32 2, %v3549_v51 }
 0x37a   :  { %v3307_v9 = vpop.eup %3306 }
 0x37b   :  { %v398_v7 = vsel %vm5097_vm1, %v396_v3, -inf  ;;  %v397_v8 = vadd.f32 %v395_v5, %v392_v4  ;;  %v1877_v14 = vmul.f32 %v1853_v11, %v390_v63  ;;  %v1851_v16 = vmul.f32 %v3307_v9, %v3291_v41 }
 0x37c   :  { %399 = vmax.xlane.f32.xlu0 %v398_v7 }
 0x37d   :  { %v401_v10 = vsel %vm5097_vm1, %v397_v8, -inf  ;;  %v1876_v21 = vmul.f32 %v1851_v16, %v390_v63 }
 0x37e   :  { %v3309_v12 = vpop.eup %3308  ;;  %402 = vmax.xlane.f32.xlu1 %v401_v10 }
 0x37f   :  { %v1875_v13 = vmul.f32 %v3309_v12, %v3293_v43 }
 0x381   :  { %v1879_v15 = vmul.f32 %v1875_v13, %v393_v59 }
 0x382   :  { %v3311_v17 = vpop.eup %3310 }
 0x383   :  { %v1881_v18 = vadd.f32 %v1879_v15, %v1877_v14  ;;  %v1873_v19 = vmul.f32 %v3311_v17, %v3295_v45 }
 0x385   :  { %v1885_v20 = vsel %vm5097_vm1, %v1881_v18, -inf  ;;  %v1878_v22 = vmul.f32 %v1873_v19, %v393_v59  ;;  %v3559_v59 = vsub.s32 %v425_v52, %v3549_v51 }
 0x386   :  { %1886 = vmax.xlane.f32.xlu1 %v1885_v20 }
 0x387   :  { %v1880_v23 = vadd.f32 %v1878_v22, %v1876_v21  ;;  %v3614_v21 = vsub.s32 3, %v3549_v51 }
 0x389   :  { %v1882_v24 = vsel %vm5097_vm1, %v1880_v23, -inf }
 0x38a   :  { %1883 = vmax.xlane.f32.xlu0 %v1882_v24 }
 0x405   :  { %v400_v25 = vpop.xlane.xlu0 %399 }
 0x406   :  { %v404_v26 = vsub.f32 %v396_v3, %v400_v25 }
 0x407   :  { %v403_v27 = vpop.xlane.xlu1 %402 }
 0x408   :  { %v406_v28 = vmul.f32 1.442695, %v404_v26  ;;  %v405_v29 = vsub.f32 %v397_v8, %v403_v27 }
 0x40a   :  { %3312 = vpow2.f32 %v406_v28  ;;  %v408_v30 = vmul.f32 1.442695, %v405_v29 }
 0x40c   :  { %3314 = vpow2.f32 %v408_v30 }
 0x40f   :  { %v1887_v31 = vpop.xlane.xlu1 %1886 }
 0x410   :  { %v1889_v32 = vsub.f32 %v1881_v18, %v1887_v31 }
 0x412   :  { %v1892_v33 = vmul.f32 1.442695, %v1889_v32 }
 0x413   :  { %v1884_v34 = vpop.xlane.xlu0 %1883 }
 0x414   :  { %3316 = vpow2.f32 %v1892_v33  ;;  %v1888_v35 = vsub.f32 %v1880_v23, %v1884_v34  ;;  %v3638_v34 = vsub.s32 4, %v3549_v51 }
 0x416   :  { %v1890_v36 = vmul.f32 1.442695, %v1888_v35 }
 0x417   :  { %v3313_v37 = vpop.eup %3312 }
 0x418   :  { %3318 = vpow2.f32 %v1890_v36  ;;  %v410_v38 = vsel %vm5097_vm1, %v3313_v37, 0.0 }
 0x419   :  { %v3315_v39 = vpop.eup %3314  ;;  %411 = vadd.xlane.f32.xlu0 %v410_v38 }
 0x41a   :  { %v413_v40 = vsel %vm5097_vm1, %v3315_v39, 0.0 }
 0x41b   :  { %414 = vadd.xlane.f32.xlu1 %v413_v40 }
 0x421   :  { %v3540_v41 = vpop.eup %3316 }
 0x422   :  { %v1897_v42 = vsel %vm5097_vm1, %v3540_v41, 0.0 }
 0x423   :  { %1898 = vadd.xlane.f32.xlu1 %v1897_v42 }
 0x425   :  { %v3544_v43 = vpop.eup %3318 }
 0x426   :  { %v1894_v44 = vsel %vm5097_vm1, %v3544_v43, 0.0 }
 0x427   :  { %1895 = vadd.xlane.f32.xlu0 %v1894_v44 }
 0x4a2   :  { %v412_v45 = vpop.xlane.xlu0 %411 }
 0x4a3   :  { %3320 = vrcp.f32 %v412_v45 }
 0x4a4   :  { %v415_v46 = vpop.xlane.xlu1 %414 }
 0x4a5   :  { %3322 = vrcp.f32 %v415_v46  ;;  %v3668_v46 = vsub.s32 6, %v3549_v51 }
 0x4ac   :  { %v1899_v50 = vpop.xlane.xlu1 %1898 }
 0x4ad   :  { %3324 = vrcp.f32 %v1899_v50 }
 0x4b0   :  { %v3321_v53 = vpop.eup %3320  ;;  %v1896_v54 = vpop.xlane.xlu0 %1895 }
 0x4b1   :  { %v3556_v58 = vmul.f32 %v3321_v53, %v3313_v37  ;;  %3326 = vrcp.f32 %v1896_v54 }
 0x4b2   :  { %v3323_v55 = vpop.eup %3322 }
 0x4b3   :  { %v3551_v56 = vmul.f32 %v3323_v55, %v3315_v39  ;;  %v429_v0 = vrot.slane %v3556_v58, %v3559_v59  ;;  %v422_v9 = vcombine.high %v3556_v58, %v3556_v58  ;;  %v3650_v39 = vsub.s32 5, %v3549_v51 }
 0x4b5   :  { %v3563_v60 = vrot.slane %v3551_v56, %v3554_v57  ;;  %v478_v62 = vrot.slane %v3551_v56, %v3559_v59  ;;  %v471_v63 = vcombine.high %v3551_v56, %v3551_v56  ;;  %v3578_v1 = vrot.slane %v3551_v56, %v3568_v61 }
 0x4b6   :  { %v445_v5 = vrot.slane %v429_v0, %v3559_v59  ;;  %v3600_v14 = vrot.slane %v3551_v56, %v3586_v6  ;;  %v437_v17 = vcombine.high %v429_v0, %v429_v0  ;;  %v436_v25 = vrot.slane %v422_v9, %v3559_v59 }
 0x4b7   :  { %613 = vbcast.lane.b32.xlu1 %v3563_v60, 256  ;;  %617 = vbcast.lane.b32.xlu0 %v3563_v60, 264  ;;  %v494_v2 = vrot.slane %v478_v62, %v3559_v59  ;;  %v486_v3 = vcombine.high %v478_v62, %v478_v62  ;;  %v485_v4 = vrot.slane %v471_v63, %v3559_v59 }
 0x4b8   :  { %v3596_v13 = vrot.slane %v445_v5, %v3554_v57  ;;  %v3623_v27 = vrot.slane %v3551_v56, %v3614_v21  ;;  %v459_v30 = vrot.slane %v437_v17, %v3559_v59  ;;  %v467_v33 = vcombine.high %v445_v5, %v445_v5 }
 0x4b9   :  { %v3589_v7 = vrot.slane %v494_v2, %v3554_v57  ;;  %v508_v8 = vrot.slane %v486_v3, %v3559_v59  ;;  %v516_v10 = vcombine.high %v494_v2, %v494_v2  ;;  %v501_v11 = vrot.slane %v485_v4, %v3559_v59 }
 0x4ba   :  { %v487_v12 = vcombine.high %v485_v4, %v485_v4  ;;  %v3325_v20 = vpop.eup %3324  ;;  %v3644_v36 = vrot.slane %v459_v30, %v3554_v57  ;;  %v469_v37 = vcombine.high %v459_v30, %v459_v30  ;;  %v3653_v40 = vrot.slane %v467_v33, %v3554_v57 }
 0x4bb   :  { %624 = vbcast.lane.b32.xlu1 %v3578_v1, 256  ;;  %628 = vbcast.lane.b32.xlu0 %v3578_v1, 264  ;;  %v3603_v15 = vrot.slane %v508_v8, %v3554_v57  ;;  %v518_v16 = vcombine.high %v508_v8, %v508_v8  ;;  %v3606_v18 = vrot.slane %v516_v10, %v3554_v57 }
 0x4bc   :  { %v3609_v19 = vrot.slane %v501_v11, %v3554_v57  ;;  %v515_v23 = vrot.slane %v487_v12, %v3559_v59  ;;  %v517_v24 = vcombine.high %v501_v11, %v501_v11  ;;  %v3630_v31 = vmul.f32 %v3325_v20, %v3540_v41 }
 0x4bd   :  { %v3617_v22 = vrot.slane %v518_v16, %v3554_v57  ;;  %v452_v41 = vrot.slane %v436_v25, %v3559_v59  ;;  %v3658_v42 = vrot.slane %v3551_v56, %v3638_v34  ;;  %v3661_v44 = vrot.slane %v469_v37, %v3554_v57 }
 0x4be   :  { %v3327_v26 = vpop.eup %3326  ;;  %v3626_v28 = vrot.slane %v515_v23, %v3554_v57  ;;  %v519_v29 = vcombine.high %v515_v23, %v515_v23  ;;  %v3633_v32 = vrot.slane %v517_v24, %v3554_v57  ;;  %v438_v45 = vcombine.high %v436_v25, %v436_v25 }
 0x4bf   :  { %635 = vbcast.lane.b32.xlu1 %v3600_v14, 256  ;;  %639 = vbcast.lane.b32.xlu0 %v3600_v14, 264  ;;  %v3647_v38 = vmul.f32 %v3327_v26, %v3544_v43  ;;  %v3665_v43 = vrot.slane %v3551_v56, %v3650_v39  ;;  %v3671_v48 = vrot.slane %v452_v41, %v3554_v57 }
 0x4c0   :  { %v3641_v35 = vrot.slane %v519_v29, %v3554_v57  ;;  %v468_v49 = vcombine.high %v452_v41, %v452_v41  ;;  %v466_v50 = vrot.slane %v438_v45, %v3559_v59  ;;  %v1962_v52 = vrot.slane %v3630_v31, %v3559_v59 }
 0x4c1   :  { %v1955_v53 = vcombine.high %v3630_v31, %v3630_v31  ;;  %v3682_v54 = vrot.slane %v3551_v56, %v3668_v46  ;;  %v1913_v62 = vrot.slane %v3647_v38, %v3559_v59  ;;  %v1906_v63 = vcombine.high %v3647_v38, %v3647_v38 }
 0x4c2   :  { %v3685_v55 = vrot.slane %v468_v49, %v3554_v57  ;;  %v3692_v0 = vrot.slane %v466_v50, %v3554_v57  ;;  %v470_v2 = vcombine.high %v466_v50, %v466_v50  ;;  %v1978_v3 = vrot.slane %v1962_v52, %v3559_v59 }
 0x4c3   :  { %646 = vbcast.lane.b32.xlu1 %v3623_v27, 256  ;;  %650 = vbcast.lane.b32.xlu0 %v3623_v27, 264  ;;  %v1970_v4 = vcombine.high %v1962_v52, %v1962_v52  ;;  %v1969_v5 = vrot.slane %v1955_v53, %v3559_v59  ;;  %v1929_v8 = vrot.slane %v1913_v62, %v3559_v59  ;;  %v3725_v49 = vsub.s32 7, %v3549_v51 }
 0x4c4   :  { %v1921_v9 = vcombine.high %v1913_v62, %v1913_v62  ;;  %v1920_v10 = vrot.slane %v1906_v63, %v3559_v59  ;;  %v3701_v11 = vrot.slane %v470_v2, %v3554_v57  ;;  %v3704_v12 = vrot.slane %v1978_v3, %v3554_v57 }
 0x4c5   :  { %v1992_v16 = vrot.slane %v1970_v4, %v3559_v59  ;;  %v2000_v17 = vcombine.high %v1978_v3, %v1978_v3  ;;  %v1985_v20 = vrot.slane %v1969_v5, %v3559_v59  ;;  %v1971_v23 = vcombine.high %v1969_v5, %v1969_v5 }
 0x4c6   :  { %5103 = vst [vmem:[#allocation9_spill] sm:$0xff] %v3704_v12  ;;  %v3709_v24 = vrot.slane %v1929_v8, %v3554_v57  ;;  %v1943_v29 = vrot.slane %v1921_v9, %v3559_v59  ;;  %v1951_v30 = vcombine.high %v1929_v8, %v1929_v8  ;;  %v688_v4 = vrot.slane %v3551_v56, %v3725_v49 }
 0x4c7   :  { %657 = vbcast.lane.b32.xlu1 %v3658_v42, 256  ;;  %661 = vbcast.lane.b32.xlu0 %v3658_v42, 264  ;;  %v3712_v25 = vrot.slane %v1992_v16, %v3554_v57  ;;  %v2002_v26 = vcombine.high %v1992_v16, %v1992_v16  ;;  %v3716_v33 = vrot.slane %v2000_v17, %v3554_v57 }
 0x4c8   :  { %5104 = vst [vmem:[#allocation10_spill] sm:$0xff] %v3709_v24  ;;  %v3719_v37 = vrot.slane %v1985_v20, %v3554_v57  ;;  %v1999_v41 = vrot.slane %v1971_v23, %v3559_v59  ;;  %v2001_v45 = vcombine.high %v1985_v20, %v1985_v20  ;;  %v3731_v52 = vrot.slane %v1943_v29, %v3554_v57 }
 0x4c9   :  { %5105 = vst [vmem:[#allocation11_spill] sm:$0xff] %v3712_v25  ;;  %5106 = vst [vmem:[#allocation12_spill] sm:$0xff] %v3716_v33  ;;  %v3728_v50 = vrot.slane %v2002_v26, %v3554_v57  ;;  %v3734_v53 = vrot.slane %v1951_v30, %v3554_v57  ;;  %v1953_v3 = vcombine.high %v1943_v29, %v1943_v29 }
 0x4ca   :  { %5107 = vst [vmem:[#allocation13_spill] sm:$0xff] %v3719_v37  ;;  %5109 = vst [vmem:[#allocation15_spill] sm:$0xff] %v3731_v52  ;;  %v3737_v62 = vrot.slane %v1999_v41, %v3554_v57  ;;  %v3740_v63 = vrot.slane %v2001_v45, %v3554_v57  ;;  %v2003_v2 = vcombine.high %v1999_v41, %v1999_v41 }
 0x4cb   :  { %668 = vbcast.lane.b32.xlu1 %v3665_v43, 256  ;;  %672 = vbcast.lane.b32.xlu0 %v3665_v43, 264  ;;  %5108 = vst [vmem:[#allocation14_spill] sm:$0xff] %v3728_v50  ;;  %5110 = vst [vmem:[#allocation16_spill] sm:$0xff] %v3734_v53  ;;  %v1936_v5 = vrot.slane %v1920_v10, %v3559_v59  ;;  %v1922_v8 = vcombine.high %v1920_v10, %v1920_v10 }
 0x4cc   :  { %5111 = vst [vmem:[#allocation17_spill] sm:$0xff] %v3737_v62  ;;  %5112 = vst [vmem:[#allocation18_spill] sm:$0xff] %v3740_v63  ;;  %v3746_v9 = vrot.slane %v2003_v2, %v3554_v57  ;;  %v3749_v16 = vrot.slane %v1953_v3, %v3554_v57  ;;  %v2095_v2 = vrot.slane %v3630_v31, %v3554_v57 }
 0x4cd   :  { %v3752_v17 = vrot.slane %v1936_v5, %v3554_v57  ;;  %v1950_v20 = vrot.slane %v1922_v8, %v3559_v59  ;;  %v1952_v23 = vcombine.high %v1936_v5, %v1936_v5  ;;  %v523_v59 = vrot.slane %v3556_v58, %v3554_v57 }
 0x4ce   :  { %5113 = vst [vmem:[#allocation19_spill] sm:$0xff] %v3746_v9  ;;  %5114 = vst [vmem:[#allocation20_spill] sm:$0xff] %v3749_v16  ;;  %v2106_v5 = vrot.slane %v3630_v31, %v3568_v61  ;;  %v2150_v47 = vrot.slane %v3630_v31, %v3650_v39  ;;  %v2172_v16 = vrot.slane %v3630_v31, %v3725_v49 }
 0x4cf   :  { %679 = vbcast.lane.b32.xlu1 %v3682_v54, 256  ;;  %683 = vbcast.lane.b32.xlu0 %v3682_v54, 264  ;;  %5115 = vst [vmem:[#allocation21_spill] sm:$0xff] %v3752_v17  ;;  %v3756_v26 = vrot.slane %v1950_v20, %v3554_v57  ;;  %v3759_v56 = vrot.slane %v1952_v23, %v3554_v57 }
 0x4d0   :  { %v1954_v10 = vcombine.high %v1950_v20, %v1950_v20  ;;  %v2117_v23 = vrot.slane %v3630_v31, %v3586_v6  ;;  %v2051_v62 = vrot.slane %v3647_v38, %v3638_v34  ;;  %v2062_v37 = vrot.slane %v3647_v38, %v3650_v39 }
 0x4d1   :  { %5116 = vst [vmem:[#allocation22_spill] sm:$0xff] %v3756_v26  ;;  %5117 = vst [vmem:[#allocation23_spill] sm:$0xff] %v3759_v56  ;;  %v2161_v56 = vrot.slane %v3630_v31, %v3668_v46  ;;  %v2073_v50 = vrot.slane %v3647_v38, %v3668_v46  ;;  %v2084_v25 = vrot.slane %v3647_v38, %v3725_v49 }
 0x4d2   :  { %v3764_v29 = vrot.slane %v1954_v10, %v3554_v57 }
 0x4d3   :  { %690 = vbcast.lane.b32.xlu1 %v688_v4, 256  ;;  %694 = vbcast.lane.b32.xlu0 %v688_v4, 264 }
 0x4d4   :  { %5118 = vst [vmem:[#allocation24_spill] sm:$0xff] %v3764_v29 }
 0x4d7   :  { %1193 = vbcast.lane.b32.xlu1 %v3563_v60, 256  ;;  %1197 = vbcast.lane.b32.xlu0 %v3563_v60, 264  ;;  %v534_v60 = vrot.slane %v3556_v58, %v3568_v61 }
 0x4db   :  { %1204 = vbcast.lane.b32.xlu1 %v3578_v1, 256  ;;  %1208 = vbcast.lane.b32.xlu0 %v3578_v1, 264  ;;  %v545_v1 = vrot.slane %v3556_v58, %v3586_v6 }
 0x4df   :  { %1215 = vbcast.lane.b32.xlu1 %v3600_v14, 256  ;;  %1219 = vbcast.lane.b32.xlu0 %v3600_v14, 264  ;;  %v556_v14 = vrot.slane %v3556_v58, %v3614_v21 }
 0x4e3   :  { %1226 = vbcast.lane.b32.xlu1 %v3623_v27, 256  ;;  %1230 = vbcast.lane.b32.xlu0 %v3623_v27, 264  ;;  %v567_v27 = vrot.slane %v3556_v58, %v3638_v34 }
 0x4e7   :  { %1237 = vbcast.lane.b32.xlu1 %v3658_v42, 256  ;;  %1241 = vbcast.lane.b32.xlu0 %v3658_v42, 264  ;;  %v578_v42 = vrot.slane %v3556_v58, %v3650_v39 }
 0x4eb   :  { %1252 = vbcast.lane.b32.xlu1 %v3665_v43, 264  ;;  %1248 = vbcast.lane.b32.xlu0 %v3665_v43, 256  ;;  %v589_v43 = vrot.slane %v3556_v58, %v3668_v46 }
 0x4ef   :  { %1259 = vbcast.lane.b32.xlu1 %v3682_v54, 256  ;;  %1263 = vbcast.lane.b32.xlu0 %v3682_v54, 264  ;;  %v600_v54 = vrot.slane %v3556_v58, %v3725_v49 }
 0x4f3   :  { %1270 = vbcast.lane.b32.xlu1 %v688_v4, 256  ;;  %1274 = vbcast.lane.b32.xlu0 %v688_v4, 264 }
 0x4f7   :  { %529 = vbcast.lane.b32.xlu1 %v523_v59, 264  ;;  %525 = vbcast.lane.b32.xlu0 %v523_v59, 256 }
 0x4fb   :  { %536 = vbcast.lane.b32.xlu1 %v534_v60, 256  ;;  %540 = vbcast.lane.b32.xlu0 %v534_v60, 264 }
 0x4ff   :  { %547 = vbcast.lane.b32.xlu1 %v545_v1, 256  ;;  %551 = vbcast.lane.b32.xlu0 %v545_v1, 264 }
 0x503   :  { %558 = vbcast.lane.b32.xlu1 %v556_v14, 256  ;;  %562 = vbcast.lane.b32.xlu0 %v556_v14, 264 }
 0x507   :  { %569 = vbcast.lane.b32.xlu1 %v567_v27, 256  ;;  %573 = vbcast.lane.b32.xlu0 %v567_v27, 264 }
 0x50b   :  { %580 = vbcast.lane.b32.xlu1 %v578_v42, 256  ;;  %584 = vbcast.lane.b32.xlu0 %v578_v42, 264 }
 0x50f   :  { %591 = vbcast.lane.b32.xlu1 %v589_v43, 256  ;;  %595 = vbcast.lane.b32.xlu0 %v589_v43, 264 }
 0x513   :  { %602 = vbcast.lane.b32.xlu1 %v600_v54, 256  ;;  %606 = vbcast.lane.b32.xlu0 %v600_v54, 264 }
 0x517   :  { %1109 = vbcast.lane.b32.xlu1 %v523_v59, 264  ;;  %1105 = vbcast.lane.b32.xlu0 %v523_v59, 256 }
 0x51b   :  { %1138 = vbcast.lane.b32.xlu1 %v556_v14, 256  ;;  %1116 = vbcast.lane.b32.xlu0 %v534_v60, 256 }
 0x51f   :  { %1149 = vbcast.lane.b32.xlu1 %v567_v27, 256  ;;  %1120 = vbcast.lane.b32.xlu0 %v534_v60, 264  ;;  %v2128_v60 = vrot.slane %v3630_v31, %v3614_v21 }
 0x523   :  { %1160 = vbcast.lane.b32.xlu1 %v578_v42, 256  ;;  %1127 = vbcast.lane.b32.xlu0 %v545_v1, 256 }
 0x527   :  { %1171 = vbcast.lane.b32.xlu1 %v589_v43, 256  ;;  %1131 = vbcast.lane.b32.xlu0 %v545_v1, 264 }
 0x529   :  { %v3794_v30 = vpop.permute.xlu1 %613  ;;  %v3796_v41 = vpop.permute.xlu0 %617 }
 0x52a   :  { %vm825_vm3 = vcmp.eq.f32.partialorder %v3589_v7, %v3796_v41  ;;  %vm824_vm5 = vcmp.eq.f32.partialorder %v3589_v7, %v3794_v30  ;;  %vm793_vm6 = vcmp.gt.f32.partialorder %v3589_v7, %v3796_v41  ;;  %vm792_vm9 = vcmp.gt.f32.partialorder %v3589_v7, %v3794_v30 }
 0x52b   :  { %1182 = vbcast.lane.b32.xlu1 %v600_v54, 256  ;;  %1142 = vbcast.lane.b32.xlu0 %v556_v14, 264  ;;  %v3366_v41 = vmov 0.0  }
 0x52d   :  { %v3798_v45 = vpop.permute.xlu1 %624  ;;  %v3800_v58 = vpop.permute.xlu0 %628 }
 0x52e   :  { %vm827_vm8 = vcmp.eq.f32.partialorder %v3603_v15, %v3800_v58  ;;  %vm826_vm11 = vcmp.eq.f32.partialorder %v3603_v15, %v3798_v45  ;;  %vm795_vm13 = vcmp.gt.f32.partialorder %v3603_v15, %v3800_v58 }
 0x52f   :  { %2097 = vbcast.lane.b32.xlu1 %v2095_v2, 256  ;;  %1153 = vbcast.lane.b32.xlu0 %v567_v27, 264  ;;  %v2139_v27 = vrot.slane %v3630_v31, %v3638_v34 }
 0x531   :  { %v3804_v3 = vpop.permute.xlu1 %635  ;;  %v3806_v4 = vpop.permute.xlu0 %639 }
 0x532   :  { %vm829_vm15 = vcmp.eq.f32.partialorder %v3606_v18, %v3806_v4  ;;  %vm796_vm1 = vcmp.gt.f32.partialorder %v3606_v18, %v3804_v3 }
 0x533   :  { %2108 = vbcast.lane.b32.xlu1 %v2106_v5, 256  ;;  %1164 = vbcast.lane.b32.xlu0 %v578_v42, 264 }
 0x535   :  { %v3810_v8 = vpop.permute.xlu1 %646  ;;  %v3812_v20 = vpop.permute.xlu0 %650 }
 0x537   :  { %2119 = vbcast.lane.b32.xlu1 %v2117_v23, 256  ;;  %1175 = vbcast.lane.b32.xlu0 %v589_v43, 264 }
 0x539   :  { %v3816_v10 = vpop.permute.xlu1 %657  ;;  %v3818_v59 = vpop.permute.xlu0 %661 }
 0x53b   :  { %2130 = vbcast.lane.b32.xlu1 %v2128_v60, 256  ;;  %1186 = vbcast.lane.b32.xlu0 %v600_v54, 264 }
 0x53d   :  { %v3822_v1 = vpop.permute.xlu1 %668  ;;  %v3824_v14 = vpop.permute.xlu0 %672 }
 0x53f   :  { %2141 = vbcast.lane.b32.xlu1 %v2139_v27, 256  ;;  %2101 = vbcast.lane.b32.xlu0 %v2095_v2, 264 }
 0x541   :  { %v3828_v42 = vpop.permute.xlu1 %679  ;;  %v3830_v43 = vpop.permute.xlu0 %683 }
 0x543   :  { %2152 = vbcast.lane.b32.xlu1 %v2150_v47, 256  ;;  %2112 = vbcast.lane.b32.xlu0 %v2106_v5, 264 }
 0x545   :  { %v3834_v29 = vpop.permute.xlu1 %690  ;;  %v3836_v54 = vpop.permute.xlu0 %694 }
 0x547   :  { %2167 = vbcast.lane.b32.xlu1 %v2161_v56, 264  ;;  %2123 = vbcast.lane.b32.xlu0 %v2117_v23, 264 }
 0x549   :  { %v3840_v26 = vpop.permute.xlu1 %1193  ;;  %v3842_v17 = vpop.permute.xlu0 %1197 }
 0x54a   :  { %5119 = vst [vmem:[#allocation25_spill] sm:$0xff] %v3840_v26  ;;  %5120 = vst [vmem:[#allocation26_spill] sm:$0xff] %v3842_v17 }
 0x54b   :  { %2178 = vbcast.lane.b32.xlu1 %v2172_v16, 264  ;;  %2134 = vbcast.lane.b32.xlu0 %v2128_v60, 264 }
 0x54d   :  { %v3846_v52 = vpop.permute.xlu1 %1204  ;;  %v3848_v53 = vpop.permute.xlu0 %1208 }
 0x54e   :  { %5121 = vst [vmem:[#allocation27_spill] sm:$0xff] %v3846_v52  ;;  %5122 = vst [vmem:[#allocation28_spill] sm:$0xff] %v3848_v53 }
 0x54f   :  { %2677 = vbcast.lane.b32.xlu1 %v2095_v2, 264  ;;  %2145 = vbcast.lane.b32.xlu0 %v2139_v27, 264 }
 0x551   :  { %v3850_v24 = vpop.permute.xlu1 %1215  ;;  %v3852_v9 = vpop.permute.xlu0 %1219 }
 0x552   :  { %5123 = vst [vmem:[#allocation29_spill] sm:$0xff] %v3850_v24  ;;  %5124 = vst [vmem:[#allocation30_spill] sm:$0xff] %v3852_v9 }
 0x553   :  { %2688 = vbcast.lane.b32.xlu1 %v2106_v5, 264  ;;  %2156 = vbcast.lane.b32.xlu0 %v2150_v47, 264 }
 0x555   :  { %v3854_v26 = vpop.permute.xlu1 %1226  ;;  %v3856_v17 = vpop.permute.xlu0 %1230 }
 0x556   :  { %5125 = vst [vmem:[#allocation31_spill] sm:$0xff] %v3854_v26  ;;  %5126 = vst [vmem:[#allocation32_spill] sm:$0xff] %v3856_v17 }
 0x557   :  { %2699 = vbcast.lane.b32.xlu1 %v2117_v23, 264  ;;  %2163 = vbcast.lane.b32.xlu0 %v2161_v56, 256 }
 0x559   :  { %v3858_v31 = vpop.permute.xlu1 %1237  ;;  %v3860_v63 = vpop.permute.xlu0 %1241 }
 0x55a   :  { %5127 = vst [vmem:[#allocation33_spill] sm:$0xff] %v3858_v31  ;;  %5128 = vst [vmem:[#allocation34_spill] sm:$0xff] %v3860_v63 }
 0x55b   :  { %2710 = vbcast.lane.b32.xlu1 %v2128_v60, 264  ;;  %2174 = vbcast.lane.b32.xlu0 %v2172_v16, 256 }
 0x55d   :  { %v3862_v52 = vpop.permute.xlu1 %1252  ;;  %v3864_v53 = vpop.permute.xlu0 %1248 }
 0x55e   :  { %5129 = vst [vmem:[#allocation35_spill] sm:$0xff] %v3862_v52  ;;  %5130 = vst [vmem:[#allocation36_spill] sm:$0xff] %v3864_v53  ;;  %v2040_v52 = vrot.slane %v3647_v38, %v3614_v21 }
 0x55f   :  { %2721 = vbcast.lane.b32.xlu1 %v2139_v27, 264  ;;  %2673 = vbcast.lane.b32.xlu0 %v2095_v2, 256 }
 0x561   :  { %v3866_v24 = vpop.permute.xlu1 %1259  ;;  %v3868_v9 = vpop.permute.xlu0 %1263 }
 0x562   :  { %5131 = vst [vmem:[#allocation37_spill] sm:$0xff] %v3866_v24  ;;  %5132 = vst [vmem:[#allocation38_spill] sm:$0xff] %v3868_v9  ;;  %v2007_v24 = vrot.slane %v3647_v38, %v3554_v57  ;;  %v2029_v9 = vrot.slane %v3647_v38, %v3586_v6 }
 0x563   :  { %2732 = vbcast.lane.b32.xlu1 %v2150_v47, 264  ;;  %2684 = vbcast.lane.b32.xlu0 %v2106_v5, 256 }
 0x565   :  { %v3870_v26 = vpop.permute.xlu1 %1270  ;;  %v3872_v17 = vpop.permute.xlu0 %1274 }
 0x566   :  { %5133 = vst [vmem:[#allocation39_spill] sm:$0xff] %v3870_v26  ;;  %5134 = vst [vmem:[#allocation40_spill] sm:$0xff] %v3872_v17 }
 0x567   :  { %2743 = vbcast.lane.b32.xlu1 %v2161_v56, 264  ;;  %2695 = vbcast.lane.b32.xlu0 %v2117_v23, 256  ;;  %v2018_v23 = vrot.slane %v3647_v38, %v3568_v61 }
 0x569   :  { %v3874_v31 = vpop.permute.xlu1 %529  ;;  %v3876_v63 = vpop.permute.xlu0 %525 }
 0x56b   :  { %2754 = vbcast.lane.b32.xlu1 %v2172_v16, 264  ;;  %2706 = vbcast.lane.b32.xlu0 %v2128_v60, 256 }
 0x56d   :  { %v3878_v53 = vpop.permute.xlu1 %536  ;;  %v3880_v2 = vpop.permute.xlu0 %540 }
 0x56f   :  { %2717 = vbcast.lane.b32.xlu0 %v2139_v27, 256  ;;  %2013 = vbcast.lane.b32.xlu1 %v2007_v24, 264 }
 0x571   :  { %v3884_v5 = vpop.permute.xlu1 %547  ;;  %v3886_v26 = vpop.permute.xlu0 %551 }
 0x573   :  { %2728 = vbcast.lane.b32.xlu0 %v2150_v47, 256  ;;  %2024 = vbcast.lane.b32.xlu1 %v2018_v23, 264 }
 0x575   :  { %v3890_v17 = vpop.permute.xlu1 %558  ;;  %v3892_v60 = vpop.permute.xlu0 %562 }
 0x577   :  { %2035 = vbcast.lane.b32.xlu1 %v2029_v9, 264  ;;  %2739 = vbcast.lane.b32.xlu0 %v2161_v56, 256 }
 0x579   :  { %v3896_v57 = vpop.permute.xlu1 %569  ;;  %v3898_v27 = vpop.permute.xlu0 %573 }
 0x57b   :  { %2046 = vbcast.lane.b32.xlu1 %v2040_v52, 264  ;;  %2750 = vbcast.lane.b32.xlu0 %v2172_v16, 256 }
 0x57d   :  { %v3902_v47 = vpop.permute.xlu1 %580  ;;  %v3904_v61 = vpop.permute.xlu0 %584 }
 0x57f   :  { %2057 = vbcast.lane.b32.xlu1 %v2051_v62, 264  ;;  %2009 = vbcast.lane.b32.xlu0 %v2007_v24, 256 }
 0x581   :  { %v3908_v6 = vpop.permute.xlu1 %591  ;;  %v3910_v56 = vpop.permute.xlu0 %595 }
 0x583   :  { %2068 = vbcast.lane.b32.xlu1 %v2062_v37, 264  ;;  %2020 = vbcast.lane.b32.xlu0 %v2018_v23, 256 }
 0x585   :  { %v3914_v21 = vpop.permute.xlu1 %602  ;;  %v3916_v16 = vpop.permute.xlu0 %606 }
 0x586   :  { %5135 = vst [vmem:[#allocation41_spill] sm:$0xff] %v3914_v21 }
 0x587   :  { %2079 = vbcast.lane.b32.xlu1 %v2073_v50, 264  ;;  %2031 = vbcast.lane.b32.xlu0 %v2029_v9, 256 }
 0x589   :  { %v3920_v34 = vpop.permute.xlu1 %1109  ;;  %v3922_v33 = vpop.permute.xlu0 %1105 }
 0x58a   :  { %5136 = vst [vmem:[#allocation42_spill] sm:$0xff] %v3920_v34  ;;  %5137 = vst [vmem:[#allocation43_spill] sm:$0xff] %v3922_v33 }
 0x58b   :  { %2090 = vbcast.lane.b32.xlu1 %v2084_v25, 264  ;;  %2042 = vbcast.lane.b32.xlu0 %v2040_v52, 256 }
 0x58d   :  { %v3926_v39 = vpop.permute.xlu1 %1138  ;;  %v3928_v12 = vpop.permute.xlu0 %1116 }
 0x58e   :  { %5138 = vst [vmem:[#allocation44_spill] sm:$0xff] %v3926_v39  ;;  %5139 = vst [vmem:[#allocation45_spill] sm:$0xff] %v3928_v12 }
 0x58f   :  { %2585 = vbcast.lane.b32.xlu1 %v2007_v24, 256  ;;  %2053 = vbcast.lane.b32.xlu0 %v2051_v62, 256 }
 0x591   :  { %v3930_v21 = vpop.permute.xlu1 %1149  ;;  %v3932_v46 = vpop.permute.xlu0 %1120 }
 0x592   :  { %5140 = vst [vmem:[#allocation46_spill] sm:$0xff] %v3930_v21  ;;  %5141 = vst [vmem:[#allocation47_spill] sm:$0xff] %v3932_v46 }
 0x593   :  { %2596 = vbcast.lane.b32.xlu1 %v2018_v23, 256  ;;  %2064 = vbcast.lane.b32.xlu0 %v2062_v37, 256 }
 0x595   :  { %v3934_v34 = vpop.permute.xlu1 %1160  ;;  %v3936_v33 = vpop.permute.xlu0 %1127 }
 0x596   :  { %5142 = vst [vmem:[#allocation48_spill] sm:$0xff] %v3934_v34  ;;  %5143 = vst [vmem:[#allocation49_spill] sm:$0xff] %v3936_v33 }
 0x597   :  { %2600 = vbcast.lane.b32.xlu1 %v2018_v23, 264  ;;  %2075 = vbcast.lane.b32.xlu0 %v2073_v50, 256 }
 0x599   :  { %v3938_v38 = vpop.permute.xlu1 %1171  ;;  %v3940_v49 = vpop.permute.xlu0 %1131 }
 0x59a   :  { %5144 = vst [vmem:[#allocation50_spill] sm:$0xff] %v3938_v38  ;;  %5145 = vst [vmem:[#allocation51_spill] sm:$0xff] %v3940_v49  ;;  %v5154_v49 = vlaneseq }
 0x59b   :  { %2611 = vbcast.lane.b32.xlu1 %v2029_v9, 264  ;;  %2086 = vbcast.lane.b32.xlu0 %v2084_v25, 256 }
 0x59d   :  { %v3942_v39 = vpop.permute.xlu1 %1182  ;;  %v3944_v12 = vpop.permute.xlu0 %1142 }
 0x59e   :  { %5146 = vst [vmem:[#allocation52_spill] sm:$0xff] %v3942_v39  ;;  %5147 = vst [vmem:[#allocation53_spill] sm:$0xff] %v3944_v12 }
 0x59f   :  { %2622 = vbcast.lane.b32.xlu1 %v2040_v52, 264  ;;  %2589 = vbcast.lane.b32.xlu0 %v2007_v24, 264 }
 0x5a1   :  { %v3946_v21 = vpop.permute.xlu1 %2097  ;;  %v3948_v46 = vpop.permute.xlu0 %1153 }
 0x5a2   :  { %5148 = vst [vmem:[#allocation54_spill] sm:$0xff] %v3948_v46 }
 0x5a3   :  { %2633 = vbcast.lane.b32.xlu1 %v2051_v62, 264  ;;  %2607 = vbcast.lane.b32.xlu0 %v2029_v9, 256 }
 0x5a5   :  { %v3950_v23 = vpop.permute.xlu1 %2108  ;;  %v3952_v34 = vpop.permute.xlu0 %1164 }
 0x5a6   :  { %5149 = vst [vmem:[#allocation55_spill] sm:$0xff] %v3952_v34 }
 0x5a7   :  { %2644 = vbcast.lane.b32.xlu1 %v2062_v37, 264  ;;  %2618 = vbcast.lane.b32.xlu0 %v2040_v52, 256 }
 0x5a9   :  { %v3954_v38 = vpop.permute.xlu1 %2119  ;;  %v3956_v33 = vpop.permute.xlu0 %1175 }
 0x5aa   :  { %5150 = vst [vmem:[#allocation56_spill] sm:$0xff] %v3956_v33 }
 0x5ab   :  { %2655 = vbcast.lane.b32.xlu1 %v2073_v50, 264  ;;  %2629 = vbcast.lane.b32.xlu0 %v2051_v62, 256 }
 0x5ad   :  { %v3958_v39 = vpop.permute.xlu1 %2130  ;;  %v3960_v24 = vpop.permute.xlu0 %1186 }
 0x5ae   :  { %5151 = vst [vmem:[#allocation57_spill] sm:$0xff] %v3958_v39  ;;  %5152 = vst [vmem:[#allocation58_spill] sm:$0xff] %v3960_v24  ;;  %v3977_v24 = vand.u32 127, %v5154_v49 }
 0x5af   :  { %2666 = vbcast.lane.b32.xlu1 %v2084_v25, 264  ;;  %2640 = vbcast.lane.b32.xlu0 %v2062_v37, 256  ;;  %v148_v37 = vadd.s32 8, %v3549_v51 }
 0x5b0   :  { %5155 = vst [vmem:[#allocation60_spill] sm:$0xff] %v3977_v24  ;;  %vm3995_vm4 = vcmp.lt.s32.totalorder %v3977_v24, %v3549_v51 }
 0x5b1   :  { %v3962_v46 = vpop.permute.xlu1 %2141  ;;  %v3964_v9 = vpop.permute.xlu0 %2101  ;;  %vm3985_vm2 = vcmp.lt.s32.totalorder %v3977_v24, %v148_v37  ;;  %vm860_vm10 = vmand %vm824_vm5, %vm3995_vm4 }
 0x5b2   :  { %5153 = vst [vmem:[#allocation59_spill] sm:$0xff] %v3962_v46  ;;  %vm861_vm7 = vmand %vm825_vm3, %vm3985_vm2  ;;  %vm794_vm3 = vcmp.gt.f32.partialorder %v3603_v15, %v3798_v45 }
 0x5b3   :  { %2651 = vbcast.lane.b32.xlu0 %v2073_v50, 256  ;;  %v5156_v50 = vmov 0  ;;  %vm893_vm12 = vmor %vm793_vm6, %vm861_vm7  ;;  %vm828_vm6 = vcmp.eq.f32.partialorder %v3606_v18, %v3804_v3 }
 0x5b4   :  { %v5157_v50 = vsel %vm3985_vm2, 4294967295, %v5156_v50  ;;  %vm863_vm14 = vmand %vm827_vm8, %vm3985_vm2  ;;  %v3150_v58 = vsel %vm893_vm12, 1.0, %v3366_v41  ;;  %vm797_vm8 = vcmp.gt.f32.partialorder %v3606_v18, %v3806_v4 }
 0x5b5   :  { %v3966_v34 = vpop.permute.xlu0 %2112  ;;  %v3968_v52 = vpop.permute.xlu1 %2152  ;;  %vm4023_vm0 = vmor %vm792_vm9, %vm860_vm10  ;;  %vm831_vm10 = vcmp.eq.f32.partialorder %v3617_v22, %v3812_v20 }
 0x5b6   :  { %vm862_vm5 = vmand %vm826_vm11, %vm3995_vm4  ;;  %v3149_v24 = vsel %vm4023_vm0, 1.0, %v3366_v41 }
 0x5b7   :  { %2662 = vbcast.lane.b32.xlu0 %v2084_v25, 256  ;;  %vm895_vm7 = vmor %vm795_vm13, %vm863_vm14  ;;  %vm5165_vm13 = vcmask 130048   ;;  %vm830_vm14 = vcmp.eq.f32.partialorder %v3617_v22, %v3810_v8 }
 0x5b8   :  { %vm865_vm9 = vmand %vm829_vm15, %vm3985_vm2  ;;  %v1023_v4 = vsel %vm5165_vm13, %v3150_v58, 0.0  ;;  %v1020_v3 = vsel %vm5165_vm13, %v3149_v24, 0.0 }
 0x5b9   :  { %v3970_v12 = vpop.permute.xlu0 %2123  ;;  %v3972_v33 = vpop.permute.xlu1 %2167  ;;  %vm4044_vm11 = vmor %vm794_vm3, %vm862_vm5  ;;  %vm799_vm3 = vcmp.gt.f32.partialorder %v3617_v22, %v3812_v20 }
 0x5ba   :  { %vm864_vm12 = vmand %vm828_vm6, %vm3995_vm4  ;;  %vm833_vm6 = vcmp.eq.f32.partialorder %v3609_v19, %v3818_v59 }
 0x5bb   :  { %vm897_vm15 = vmor %vm797_vm8, %vm865_vm9 }
 0x5bc   :  { %vm867_vm5 = vmand %vm831_vm10, %vm3985_vm2  ;;  %vm832_vm10 = vcmp.eq.f32.partialorder %v3609_v19, %v3816_v10 }
 0x5bd   :  { %v3974_v62 = vpop.permute.xlu0 %2134  ;;  %v3982_v39 = vpop.permute.xlu1 %2178  ;;  %vm4068_vm0 = vmor %vm796_vm1, %vm864_vm12  ;;  %vm801_vm12 = vcmp.gt.f32.partialorder %v3609_v19, %v3818_v59 }
 0x5be   :  { %vm866_vm8 = vmand %vm830_vm14, %vm3995_vm4  ;;  %v3153_v59 = vsel %vm4068_vm0, 1.0, %v3366_v41 }
 0x5bf   :  { %vm5169_vm9 = vmmov %vm5165_vm13 }
 0x5c0   :  { %vm899_vm1 = vmor %vm799_vm3, %vm867_vm5 }
 0x5c1   :  { %v3980_v46 = vpop.permute.xlu0 %2145  ;;  %v4005_v37 = vpop.permute.xlu1 %2677  ;;  %vm869_vm14 = vmand %vm833_vm6, %vm3985_vm2  ;;  %vm834_vm6 = vcmp.eq.f32.partialorder %v3626_v28, %v3822_v1  ;;  %v3156_v45 = vsel %vm899_vm1, 1.0, %v3366_v41  ;;  %vm802_vm1 = vcmp.gt.f32.partialorder %v3626_v28, %v3822_v1 }
 0x5c2   :  { %vm5170_vm13 = vmmov %vm5169_vm9 }
 0x5c3   :  { %vm868_vm3 = vmand %vm832_vm10, %vm3995_vm4 }
 0x5c4   :  { %vm5173_vm5 = vmmov %vm5170_vm13 }
 0x5c5   :  { %v3991_v25 = vpop.permute.xlu0 %2156  ;;  %v4031_v30 = vpop.permute.xlu1 %2688 }
 0x5c6   :  { %5162 = vst [vmem:[#allocation61_spill] sm:$0xff] %v4031_v30  ;;  %v3152_v30 = vsel %vm895_vm7, 1.0, %v3366_v41  ;;  %vm798_vm7 = vcmp.gt.f32.partialorder %v3617_v22, %v3810_v8 }
 0x5c7   :  { %v1029_v58 = vsel %vm5169_vm9, %v3152_v30, 0.0  ;;  %vm4095_vm9 = vmor %vm798_vm7, %vm866_vm8  ;;  %vm803_vm8 = vcmp.gt.f32.partialorder %v3626_v28, %v3824_v14 }
 0x5c8   :  { %vm901_vm7 = vmor %vm801_vm12, %vm869_vm14 }
 0x5c9   :  { %v4015_v51 = vpop.permute.xlu0 %2163  ;;  %v4063_v18 = vpop.permute.xlu1 %2699  ;;  %vm4132_vm12 = vmand %vm834_vm6, %vm3995_vm4  ;;  %vm839_vm6 = vcmp.eq.f32.partialorder %v3641_v35, %v3836_v54 }
 0x5ca   :  { %5166 = vst [vmem:[#allocation62_spill] sm:$0xff] %v4063_v18  ;;  %v3154_v18 = vsel %vm897_vm15, 1.0, %v3366_v41  ;;  %vm800_vm15 = vcmp.gt.f32.partialorder %v3609_v19, %v3816_v10  ;;  %vm5178_vm14 = vmmov %vm5173_vm5  ;;  %v3155_v19 = vsel %vm4095_vm9, 1.0, %v3366_v41  ;;  %v3158_v10 = vsel %vm901_vm7, 1.0, %v3366_v41 }
 0x5cb   :  { %v1035_v20 = vsel %vm5173_vm5, %v3154_v18, 0.0  ;;  %vm4124_vm0 = vmor %vm800_vm15, %vm868_vm3  ;;  %vm805_vm3 = vcmp.gt.f32.partialorder %v3633_v32, %v3830_v43 }
 0x5cc   :  { %vm5183_vm7 = vmmov %vm5173_vm5 }
 0x5cd   :  { %v4042_v15 = vpop.permute.xlu0 %2174  ;;  %v4103_v22 = vpop.permute.xlu1 %2710 }
 0x5d1   :  { %v4082_v24 = vpop.permute.xlu0 %2673 }
 0x5d3   :  { %1024 = vadd.xlane.f32.xlu1 %v1023_v4  ;;  %v3151_v4 = vsel %vm4044_vm11, 1.0, %v3366_v41  ;;  %vm835_vm11 = vcmp.eq.f32.partialorder %v3626_v28, %v3824_v14  ;;  %v3157_v14 = vsel %vm4124_vm0, 1.0, %v3366_v41  ;;  %vm875_vm0 = vmand %vm839_vm6, %vm3985_vm2  ;;  %vm809_vm6 = vcmp.eq.f32.partialorder %v3596_v13, %v3874_v31 }
 0x5d4   :  { %v1026_v8 = vsel %vm5170_vm13, %v3151_v4, 0.0  ;;  %vm871_vm10 = vmand %vm835_vm11, %vm3985_vm2  ;;  %vm837_vm13 = vcmp.eq.f32.partialorder %v3633_v32, %v3830_v43  ;;  %vm836_vm11 = vcmp.eq.f32.partialorder %v3633_v32, %v3828_v42 }
 0x5d5   :  { %v4118_v18 = vpop.permute.xlu0 %2684  ;;  %vm4143_vm15 = vmor %vm803_vm8, %vm871_vm10  ;;  %vm804_vm10 = vcmp.gt.f32.partialorder %v3633_v32, %v3828_v42 }
 0x5d6   :  { %1021 = vadd.xlane.f32.xlu0 %v1020_v3  ;;  %v1032_v3 = vsel %vm5173_vm5, %v3153_v59, 0.0  ;;  %vm4154_vm9 = vmand %vm837_vm13, %vm3985_vm2  ;;  %v1038_v59 = vsel %vm5183_vm7, %v3155_v19, 0.0  ;;  %v3160_v1 = vsel %vm4143_vm15, 1.0, %v3366_v41  ;;  %vm806_vm15 = vcmp.gt.f32.partialorder %v3641_v35, %v3834_v29 }
 0x5d7   :  { %1030 = vadd.xlane.f32.xlu1 %v1029_v58  ;;  %v1041_v58 = vsel %vm5178_vm14, %v3156_v45, 0.0  ;;  %vm4168_vm8 = vmor %vm802_vm1, %vm4132_vm12  ;;  %vm838_vm14 = vcmp.eq.f32.partialorder %v3641_v35, %v3834_v29  ;;  %vm807_vm12 = vcmp.gt.f32.partialorder %v3641_v35, %v3836_v54 }
 0x5d8   :  { %vm872_vm13 = vmand %vm836_vm11, %vm3995_vm4  ;;  %vm808_vm11 = vcmp.eq.f32.partialorder %v3596_v13, %v3876_v63  ;;  %v3159_v54 = vsel %vm4168_vm8, 1.0, %v3366_v41 }
 0x5d9   :  { %v4182_v28 = vpop.permute.xlu0 %2695  ;;  %vm905_vm1 = vmor %vm805_vm3, %vm4154_vm9 }
 0x5da   :  { %1027 = vadd.xlane.f32.xlu0 %v1026_v8  ;;  %v3367_v8 = vmov 0   ;;  %vm5186_vm7 = vmmov %vm5173_vm5 }
 0x5db   :  { %1036 = vadd.xlane.f32.xlu1 %v1035_v20  ;;  %3278 = vset.pattern.permute.xlu0 %v3367_v8  ;;  %v4158_v20 = vpop.permute.xlu1 %2721  ;;  %v1044_v42 = vsel %vm5186_vm7, %v3157_v14, 0.0  ;;  %vm874_vm3 = vmand %vm838_vm14, %vm3995_vm4 }
 0x5dc   :  { %3279 = vset.pattern.permute.xlu1 %v3367_v8  ;;  %vm5189_vm9 = vmmov %vm5186_vm7  ;;  %vm811_vm7 = vcmp.eq.f32.partialorder %v3644_v36, %v3880_v2 }
 0x5dd   :  { %v1053_v43 = vsel %vm5189_vm9, %v3160_v1, 0.0  ;;  %vm844_vm14 = vmand %vm808_vm11, %vm3995_vm4  ;;  %v4222_v19 = vpop.permute.xlu0 %2706  ;;  %vm810_vm11 = vcmp.eq.f32.partialorder %v3644_v36, %v3878_v53 }
 0x5de   :  { %1033 = vadd.xlane.f32.xlu0 %v1032_v3  ;;  %v1047_v3 = vsel %vm5173_vm5, %v3158_v10, 0.0  ;;  %vm4199_vm5 = vmor %vm804_vm10, %vm872_vm13  ;;  %vm776_vm13 = vcmp.gt.f32.partialorder %v3596_v13, %v3876_v63  ;;  %v1050_v10 = vsel %vm5189_vm9, %v3159_v54, 0.0 }
 0x5df   :  { %1042 = vadd.xlane.f32.xlu1 %v1041_v58  ;;  %v4207_v32 = vpop.permute.xlu1 %2732  ;;  %v3162_v58 = vsel %vm905_vm1, 1.0, %v3366_v41  ;;  %vm907_vm10 = vmor %vm807_vm12, %vm875_vm0  ;;  %vm777_vm1 = vcmp.gt.f32.partialorder %v3596_v13, %v3874_v31  ;;  %v3161_v8 = vsel %vm4199_vm5, 1.0, %v3366_v41 }
 0x5e0   :  { %vm4228_vm8 = vmor %vm806_vm15, %vm874_vm3  ;;  %v3164_v35 = vsel %vm907_vm10, 1.0, %v3366_v41  ;;  %vm779_vm3 = vcmp.gt.f32.partialorder %v3644_v36, %v3880_v2  ;;  %vm778_vm10 = vcmp.gt.f32.partialorder %v3644_v36, %v3878_v53 }
 0x5e1   :  { %vm845_vm12 = vmand %vm809_vm6, %vm3985_vm2  ;;  %v4266_v45 = vpop.permute.xlu0 %2717 }
 0x5e2   :  { %1039 = vadd.xlane.f32.xlu0 %v1038_v59  ;;  %vm5192_vm0 = vmmov %vm5189_vm9  ;;  %vm813_vm9 = vcmp.eq.f32.partialorder %v3653_v40, %v3886_v26  ;;  %v3163_v59 = vsel %vm4228_vm8, 1.0, %v3366_v41  ;;  %vm815_vm8 = vcmp.eq.f32.partialorder %v3661_v44, %v3892_v60 }
 0x5e3   :  { %1048 = vadd.xlane.f32.xlu1 %v1047_v3  ;;  %v1059_v63 = vsel %vm5192_vm0, %v3162_v58, 0.0  ;;  %vm876_vm15 = vmor %vm776_vm13, %vm844_vm14  ;;  %v4247_v13 = vpop.permute.xlu1 %2743  ;;  %v1056_v29 = vsel %vm5192_vm0, %v3161_v8, 0.0  ;;  %v1062_v53 = vsel %vm5192_vm0, %v3163_v59, 0.0  ;;  %v5229_v8 = vld [vmem:[#allocation14_spill] sm:$0xff] }
 0x5e4   :  { %vm847_vm6 = vmand %vm811_vm7, %vm3985_vm2  ;;  %vm812_vm7 = vcmp.eq.f32.partialorder %v3653_v40, %v3884_v5  ;;  %v3133_v3 = vsel %vm876_vm15, 1.0, %v3366_v41  ;;  %vm780_vm15 = vcmp.gt.f32.partialorder %v3653_v40, %v3884_v5 }
 0x5e5   :  { %vm4252_vm5 = vmor %vm777_vm1, %vm845_vm12  ;;  %vm781_vm12 = vcmp.gt.f32.partialorder %v3653_v40, %v3886_v26 }
 0x5e6   :  { %1045 = vadd.xlane.f32.xlu0 %v1044_v42  ;;  %vm846_vm13 = vmand %vm810_vm11, %vm3995_vm4  ;;  %v3134_v2 = vsel %vm4252_vm5, 1.0, %v3366_v41  ;;  %v4302_v42 = vpop.permute.xlu0 %2728 }
 0x5e7   :  { %1054 = vadd.xlane.f32.xlu1 %v1053_v43  ;;  %vm5195_vm14 = vmmov %vm5192_vm0  ;;  %v4287_v36 = vpop.permute.xlu1 %2754 }
 0x5e8   :  { %v1065_v30 = vsel %vm5195_vm14, %v3164_v35, 0.0  ;;  %vm879_vm1 = vmor %vm779_vm3, %vm847_vm6 }
 0x5e9   :  { %vm849_vm11 = vmand %vm813_vm9, %vm3985_vm2  ;;  %vm814_vm9 = vcmp.eq.f32.partialorder %v3661_v44, %v3890_v17  ;;  %v3136_v1 = vsel %vm879_vm1, 1.0, %v3366_v41  ;;  %vm782_vm1 = vcmp.gt.f32.partialorder %v3661_v44, %v3890_v17 }
 0x5ea   :  { %1051 = vadd.xlane.f32.xlu0 %v1050_v10  ;;  %vm4279_vm14 = vmor %vm778_vm10, %vm846_vm13  ;;  %vm783_vm13 = vcmp.gt.f32.partialorder %v3661_v44, %v3892_v60  ;;  %v4346_v4 = vpop.permute.xlu0 %2739 }
 0x5eb   :  { %1060 = vadd.xlane.f32.xlu1 %v1059_v63  ;;  %vm848_vm3 = vmand %vm812_vm7, %vm3995_vm4  ;;  %v3135_v54 = vsel %vm4279_vm14, 1.0, %v3366_v41  ;;  %v4327_v44 = vpop.permute.xlu1 %2013 }
 0x5ec   :  { %vm5198_vm6 = vmmov %vm5192_vm0  ;;  %vm817_vm0 = vcmp.eq.f32.partialorder %v3671_v48, %v3898_v27 }
 0x5ed   :  { %v972_v26 = vsel %vm5198_vm6, %v3133_v3, 0.0  ;;  %vm881_vm10 = vmor %vm781_vm12, %vm849_vm11  ;;  %v975_v7 = vsel %vm5198_vm6, %v3134_v2, 0.0  ;;  %v5212_v3 = vld [vmem:[#allocation41_spill] sm:$0xff] }
 0x5ee   :  { %1057 = vadd.xlane.f32.xlu0 %v1056_v29  ;;  %vm851_vm7 = vmand %vm815_vm8, %vm3985_vm2  ;;  %vm816_vm8 = vcmp.eq.f32.partialorder %v3671_v48, %v3896_v57  ;;  %v3138_v40 = vsel %vm881_vm10, 1.0, %v3366_v41  ;;  %vm784_vm10 = vcmp.gt.f32.partialorder %v3671_v48, %v3896_v57  ;;  %v4382_v29 = vpop.permute.xlu0 %2750 }
 0x5ef   :  { %1066 = vadd.xlane.f32.xlu1 %v1065_v30  ;;  %vm4308_vm5 = vmor %vm780_vm15, %vm848_vm3  ;;  %vm785_vm3 = vcmp.gt.f32.partialorder %v3671_v48, %v3898_v27  ;;  %v4367_v48 = vpop.permute.xlu1 %2024  ;;  %v5234_v30 = vld [vmem:[#allocation59_spill] sm:$0xff] }
 0x5f0   :  { %vm850_vm12 = vmand %vm814_vm9, %vm3995_vm4  ;;  %v3137_v10 = vsel %vm4308_vm5, 1.0, %v3366_v41  ;;  %vm821_vm5 = vcmp.eq.f32.partialorder %v3685_v55, %v3910_v56 }
 0x5f1   :  { %vm5201_vm11 = vmmov %vm5198_vm6  ;;  %vm819_vm6 = vcmp.eq.f32.partialorder %v3692_v0, %v3904_v61 }
 0x5f2   :  { %1063 = vadd.xlane.f32.xlu0 %v1062_v53  ;;  %v981_v60 = vsel %vm5201_vm11, %v3136_v1, 0.0  ;;  %vm883_vm15 = vmor %vm783_vm13, %vm851_vm7  ;;  %v978_v17 = vsel %vm5201_vm11, %v3135_v54, 0.0  ;;  %v4430_v1 = vpop.permute.xlu0 %2009  ;;  %v5241_v53 = vld [vmem:[#allocation17_spill] sm:$0xff] }
 0x5f3   :  { %973 = vadd.xlane.f32.xlu1 %v972_v26  ;;  %vm853_vm9 = vmand %vm817_vm0, %vm3985_vm2  ;;  %vm818_vm0 = vcmp.eq.f32.partialorder %v3692_v0, %v3902_v47  ;;  %v3140_v63 = vsel %vm883_vm15, 1.0, %v3366_v41  ;;  %vm786_vm15 = vcmp.gt.f32.partialorder %v3692_v0, %v3902_v47  ;;  %v5213_v47 = vld [vmem:[#allocation9_spill] sm:$0xff] }
 0x5f4   :  { %vm4332_vm14 = vmor %vm782_vm1, %vm850_vm12  ;;  %vm787_vm12 = vcmp.gt.f32.partialorder %v3692_v0, %v3904_v61 }
 0x5f5   :  { %vm852_vm13 = vmand %vm816_vm8, %vm3995_vm4  ;;  %v3139_v61 = vsel %vm4332_vm14, 1.0, %v3366_v41 }
 0x5f6   :  { %976 = vadd.xlane.f32.xlu0 %v975_v7  ;;  %vm5204_vm7 = vmmov %vm5201_vm11 }
 0x5f7   :  { %982 = vadd.xlane.f32.xlu1 %v981_v60  ;;  %v987_v58 = vsel %vm5204_vm7, %v3138_v40, 0.0  ;;  %vm885_vm1 = vmor %vm785_vm3, %vm853_vm9  ;;  %v5219_v60 = vld [vmem:[#allocation11_spill] sm:$0xff] }
 0x5f8   :  { %vm855_vm8 = vmand %vm819_vm6, %vm3985_vm2  ;;  %vm820_vm6 = vcmp.eq.f32.partialorder %v3685_v55, %v3908_v6  ;;  %v3142_v35 = vsel %vm885_vm1, 1.0, %v3366_v41  ;;  %vm788_vm1 = vcmp.gt.f32.partialorder %v3685_v55, %v3908_v6 }
 0x5f9   :  { %vm5205_vm11 = vmmov %vm5204_vm7 }
 0x5fa   :  { %979 = vadd.xlane.f32.xlu0 %v978_v17  ;;  %v984_v57 = vsel %vm5205_vm11, %v3137_v10, 0.0  ;;  %vm4359_vm7 = vmor %vm784_vm10, %vm852_vm13  ;;  %vm789_vm13 = vcmp.gt.f32.partialorder %v3685_v55, %v3910_v56  ;;  %v4407_v55 = vpop.permute.xlu1 %2035  ;;  %v5223_v17 = vld [vmem:[#allocation12_spill] sm:$0xff] }
 0x5fb   :  { %988 = vadd.xlane.f32.xlu1 %v987_v58  ;;  %vm854_vm3 = vmand %vm818_vm0, %vm3995_vm4  ;;  %v3141_v59 = vsel %vm4359_vm7, 1.0, %v3366_v41 }
 0x5fc   :  { %vm5208_vm9 = vmmov %vm5205_vm11  ;;  %vm823_vm11 = vcmp.eq.f32.partialorder %v3701_v11, %v3916_v16 }
 0x5fd   :  { %v993_v27 = vsel %vm5208_vm9, %v3140_v63, 0.0  ;;  %vm887_vm10 = vmor %vm787_vm12, %vm855_vm8  ;;  %v990_v31 = vsel %vm5208_vm9, %v3139_v61, 0.0  ;;  %v5277_v63 = vld [vmem:[#allocation23_spill] sm:$0xff] }
 0x5fe   :  { %985 = vadd.xlane.f32.xlu0 %v984_v57  ;;  %vm857_vm0 = vmand %vm821_vm5, %vm3985_vm2  ;;  %vm822_vm5 = vcmp.eq.f32.partialorder %v3701_v11, %v5212_v3  ;;  %v3144_v0 = vsel %vm887_vm10, 1.0, %v3366_v41  ;;  %v4447_v54 = vpop.permute.xlu1 %2046  ;;  %v5228_v57 = vld [vmem:[#allocation57_spill] sm:$0xff] }
 0x5ff   :  { %994 = vadd.xlane.f32.xlu1 %v993_v27  ;;  %vm4388_vm14 = vmor %vm786_vm15, %vm854_vm3  ;;  %vm791_vm3 = vcmp.gt.f32.partialorder %v3701_v11, %v3916_v16 }
 0x600   :  { %vm856_vm12 = vmand %vm820_vm6, %vm3995_vm4  ;;  %v3143_v2 = vsel %vm4388_vm14, 1.0, %v3366_v41  ;;  %vm2277_vm14 = vcmp.gt.f32.partialorder %v5213_v47, %v3964_v9 }
 0x601   :  { %vm5211_vm8 = vmmov %vm5208_vm9  ;;  %vm2308_vm9 = vcmp.eq.f32.partialorder %v5213_v47, %v3946_v21 }
 0x602   :  { %991 = vadd.xlane.f32.xlu0 %v990_v31  ;;  %v999_v56 = vsel %vm5211_vm8, %v3142_v35, 0.0  ;;  %vm889_vm15 = vmor %vm789_vm13, %vm857_vm0  ;;  %v996_v6 = vsel %vm5211_vm8, %v3141_v59, 0.0  ;;  %vm2309_vm13 = vcmp.eq.f32.partialorder %v5213_v47, %v3964_v9  ;;  %v4491_v27 = vpop.permute.xlu1 %2057  ;;  %v5257_v35 = vld [vmem:[#allocation10_spill] sm:$0xff] }
 0x603   :  { %1000 = vadd.xlane.f32.xlu1 %v999_v56  ;;  %vm859_vm6 = vmand %vm823_vm11, %vm3985_vm2  ;;  %vm790_vm11 = vcmp.gt.f32.partialorder %v3701_v11, %v5212_v3  ;;  %v3146_v7 = vsel %vm889_vm15, 1.0, %v3366_v41  ;;  %vm2311_vm15 = vcmp.eq.f32.partialorder %v5219_v60, %v3966_v34  ;;  %v4471_v11 = vpop.permute.xlu0 %2020  ;;  %v5235_v56 = vld [vmem:[#allocation13_spill] sm:$0xff] }
 0x604   :  { %vm4412_vm7 = vmor %vm788_vm1, %vm856_vm12  ;;  %vm2276_vm12 = vcmp.gt.f32.partialorder %v5213_v47, %v3946_v21 }
 0x605   :  { %vm4418_vm10 = vmand %vm822_vm5, %vm3995_vm4  ;;  %v3145_v21 = vsel %vm4412_vm7, 1.0, %v3366_v41 }
 0x606   :  { %997 = vadd.xlane.f32.xlu0 %v996_v6  ;;  %vm5218_vm0 = vmmov %vm5211_vm8 }
 0x607   :  { %v1005_v26 = vsel %vm5218_vm0, %v3144_v0, 0.0  ;;  %vm891_vm1 = vmor %vm791_vm3, %vm859_vm6  ;;  %v1002_v43 = vsel %vm5218_vm0, %v3143_v2, 0.0  ;;  %v4513_v59 = vpop.permute.xlu0 %2031 }
 0x608   :  { %1006 = vadd.xlane.f32.xlu1 %v1005_v26  ;;  %vm2340_vm5 = vmand %vm2308_vm9, %vm3995_vm4  ;;  %vm2310_vm9 = vcmp.eq.f32.partialorder %v5219_v60, %v3950_v23  ;;  %v3148_v9 = vsel %vm891_vm1, 1.0, %v3366_v41  ;;  %vm2278_vm1 = vcmp.gt.f32.partialorder %v5219_v60, %v3950_v23 }
 0x609   :  { %vm2341_vm8 = vmand %vm2309_vm13, %vm3985_vm2 }
 0x60a   :  { %1003 = vadd.xlane.f32.xlu0 %v1002_v43  ;;  %vm5220_vm3 = vmmov %vm5218_vm0  ;;  %vm2312_vm0 = vcmp.eq.f32.partialorder %v5223_v17, %v3954_v38 }
 0x60b   :  { %v1011_v16 = vsel %vm5220_vm3, %v3146_v7, 0.0  ;;  %vm890_vm6 = vmor %vm790_vm11, %vm4418_vm10  ;;  %vm2279_vm3 = vcmp.gt.f32.partialorder %v5219_v60, %v3966_v34  ;;  %vm5224_vm11 = vcmask 130048   ;;  %v4551_v26 = vpop.permute.xlu0 %2042 }
 0x60c   :  { %1012 = vadd.xlane.f32.xlu1 %v1011_v16  ;;  %vm4461_vm13 = vmor %vm2276_vm12, %vm2340_vm5  ;;  %v1008_v5 = vsel %vm5224_vm11, %v3145_v21, 0.0  ;;  %v3147_v10 = vsel %vm890_vm6, 1.0, %v3366_v41 }
 0x60d   :  { %vm2373_vm7 = vmor %vm2277_vm14, %vm2341_vm8  ;;  %vm2314_vm8 = vcmp.eq.f32.partialorder %v5229_v8, %v5228_v57  ;;  %v3185_v34 = vsel %vm4461_vm13, 1.0, %v3366_v41 }
 0x60e   :  { %vm2343_vm10 = vmand %vm2311_vm15, %vm3985_vm2  ;;  %1009 = vadd.xlane.f32.xlu0 %v1008_v5  ;;  %v3186_v23 = vsel %vm2373_vm7, 1.0, %v3366_v41  ;;  %vm2282_vm7 = vcmp.gt.f32.partialorder %v5229_v8, %v5228_v57  ;;  %v5254_v57 = vld [vmem:[#allocation19_spill] sm:$0xff] }
 0x60f   :  { %vm2342_vm12 = vmand %vm2310_vm9, %vm3995_vm4  ;;  %vm2313_vm9 = vcmp.eq.f32.partialorder %v5223_v17, %v3970_v12  ;;  %v4595_v5 = vpop.permute.xlu0 %2053 }
 0x610   :  { %vm5225_vm5 = vmmov %vm5224_vm11 }
 0x611   :  { %v1017_v58 = vsel %vm5225_vm5, %v3148_v9, 0.0  ;;  %vm4482_vm14 = vmand %vm2312_vm0, %vm3995_vm4 }
 0x612   :  { %1018 = vadd.xlane.f32.xlu1 %v1017_v58  ;;  %vm2375_vm6 = vmor %vm2279_vm3, %vm2343_vm10  ;;  %vm2316_vm3 = vcmp.eq.f32.partialorder %v5235_v56, %v5234_v30  ;;  %vm5236_vm10 = vcmp.gt.f32.partialorder %v5223_v17, %v3954_v38  ;;  %v4536_v38 = vpop.permute.xlu1 %2068 }
 0x613   :  { %vm5230_vm0 = vmmov %vm5225_vm5  ;;  %v3188_v3 = vsel %vm2375_vm6, 1.0, %v3366_v41  ;;  %vm2284_vm6 = vcmp.gt.f32.partialorder %v5235_v56, %v5234_v30 }
 0x614   :  { %v1014_v61 = vsel %vm5230_vm0, %v3147_v10, 0.0  ;;  %vm4499_vm11 = vmor %vm2278_vm1, %vm2342_vm12  ;;  %vm2281_vm12 = vcmp.gt.f32.partialorder %v5223_v17, %v3970_v12 }
 0x615   :  { %vm2346_vm5 = vmand %vm2314_vm8, %vm3995_vm4  ;;  %1015 = vadd.xlane.f32.xlu0 %v1014_v61  ;;  %vm2315_vm8 = vcmp.eq.f32.partialorder %v5229_v8, %v3974_v62  ;;  %v3187_v6 = vsel %vm4499_vm11, 1.0, %v3366_v41  ;;  %v4632_v61 = vpop.permute.xlu0 %2064 }
 0x616   :  { %vm5233_vm15 = vmmov %vm5230_vm0  ;;  %v4578_v21 = vpop.permute.xlu1 %2079 }
 0x617   :  { %v2503_v31 = vsel %vm5233_vm15, %v3186_v23, 0.0  ;;  %vm2376_vm1 = vmor %vm5236_vm10, %vm4482_vm14 }
 0x618   :  { %2504 = vadd.xlane.f32.xlu1 %v2503_v31  ;;  %vm2345_vm13 = vmand %vm2313_vm9, %vm3985_vm2  ;;  %vm2318_vm9 = vcmp.eq.f32.partialorder %v5241_v53, %v3968_v52  ;;  %v3189_v14 = vsel %vm2376_vm1, 1.0, %v3366_v41 }
 0x619   :  { %vm5237_vm15 = vmmov %vm5230_vm0 }
 0x61a   :  { %v2500_v0 = vsel %vm5237_vm15, %v3185_v34, 0.0  ;;  %vm4528_vm0 = vmor %vm2282_vm7, %vm2346_vm5  ;;  %vm2283_vm5 = vcmp.gt.f32.partialorder %v5229_v8, %v3974_v62 }
 0x61b   :  { %vm2348_vm14 = vmand %vm2316_vm3, %vm3995_vm4  ;;  %2501 = vadd.xlane.f32.xlu0 %v2500_v0  ;;  %v3191_v16 = vsel %vm4528_vm0, 1.0, %v3366_v41 }
 0x61c   :  { %vm5240_vm10 = vmmov %vm5237_vm15  ;;  %vm2317_vm15 = vcmp.eq.f32.partialorder %v5235_v56, %v3980_v46 }
 0x61d   :  { %v2509_v12 = vsel %vm5240_vm10, %v3188_v3, 0.0  ;;  %vm2377_vm7 = vmor %vm2281_vm12, %vm2345_vm13  ;;  %v2506_v2 = vsel %vm5240_vm10, %v3187_v6, 0.0  ;;  %vm2286_vm13 = vcmp.gt.f32.partialorder %v5241_v53, %v3968_v52  ;;  %v5248_v52 = vld [vmem:[#allocation18_spill] sm:$0xff]  ;;  %v5261_v3 = vld [vmem:[#allocation16_spill] sm:$0xff] }
 0x61e   :  { %2510 = vadd.xlane.f32.xlu1 %v2509_v12  ;;  %vm2347_vm3 = vmand %vm2315_vm8, %vm3985_vm2  ;;  %v3190_v60 = vsel %vm2377_vm7, 1.0, %v3366_v41  ;;  %v5263_v12 = vld [vmem:[#allocation15_spill] sm:$0xff] }
 0x61f   :  { %vm4557_vm11 = vmor %vm2284_vm6, %vm2348_vm14  ;;  %2507 = vadd.xlane.f32.xlu0 %v2506_v2  ;;  %vm2285_vm6 = vcmp.gt.f32.partialorder %v5235_v56, %v3980_v46 }
 0x620   :  { %vm4563_vm1 = vmand %vm2318_vm9, %vm3995_vm4  ;;  %vm2319_vm9 = vcmp.eq.f32.partialorder %v5241_v53, %v3991_v25  ;;  %v3193_v58 = vsel %vm4557_vm11, 1.0, %v3366_v41  ;;  %vm2322_vm11 = vcmp.eq.f32.partialorder %v5254_v57, %v4042_v15 }
 0x621   :  { %vm5246_vm12 = vmmov %vm5240_vm10 }
 0x622   :  { %v2512_v43 = vsel %vm5246_vm12, %v3189_v14, 0.0  ;;  %vm2379_vm8 = vmor %vm2283_vm5, %vm2347_vm3  ;;  %vm2321_vm5 = vcmp.eq.f32.partialorder %v5248_v52, %v3972_v33 }
 0x623   :  { %2513 = vadd.xlane.f32.xlu1 %v2512_v43  ;;  %vm2349_vm14 = vmand %vm2317_vm15, %vm3985_vm2  ;;  %v3192_v17 = vsel %vm2379_vm8, 1.0, %v3366_v41  ;;  %vm2287_vm15 = vcmp.gt.f32.partialorder %v5241_v53, %v3991_v25  ;;  %v4617_v25 = vpop.permute.xlu1 %2090  ;;  %v5265_v53 = vld [vmem:[#allocation20_spill] sm:$0xff] }
 0x624   :  { %vm5247_vm7 = vmmov %vm5240_vm10  ;;  %vm2320_vm10 = vcmp.eq.f32.partialorder %v5248_v52, %v4015_v51 }
 0x625   :  { %v2515_v9 = vsel %vm5247_vm7, %v3190_v60, 0.0  ;;  %vm5249_vm12 = vmmov %vm5247_vm7  ;;  %v2521_v10 = vsel %vm5247_vm7, %v3192_v17, 0.0  ;;  %v5274_v17 = vld [vmem:[#allocation22_spill] sm:$0xff] }
 0x626   :  { %2516 = vadd.xlane.f32.xlu0 %v2515_v9  ;;  %v2518_v40 = vsel %vm5249_vm12, %v3191_v16, 0.0  ;;  %vm4589_vm0 = vmor %vm2286_vm13, %vm4563_vm1  ;;  %vm2288_vm13 = vcmp.gt.f32.partialorder %v5248_v52, %v4015_v51  ;;  %v5272_v16 = vld [vmem:[#allocation21_spill] sm:$0xff] }
 0x627   :  { %2519 = vadd.xlane.f32.xlu1 %v2518_v40  ;;  %vm2381_vm3 = vmor %vm2285_vm6, %vm2349_vm14  ;;  %vm2289_vm14 = vcmp.gt.f32.partialorder %v5248_v52, %v3972_v33  ;;  %v3195_v23 = vsel %vm4589_vm0, 1.0, %v3366_v41  ;;  %v4648_v56 = vpop.permute.xlu1 %2585 }
 0x628   :  { %vm2351_vm1 = vmand %vm2319_vm9, %vm3985_vm2  ;;  %v3194_v51 = vsel %vm2381_vm3, 1.0, %v3366_v41  ;;  %vm5256_vm3 = vcmask 130048  }
 0x629   :  { %vm2352_vm8 = vmand %vm2320_vm10, %vm3995_vm4  ;;  %vm2323_vm10 = vcmp.eq.f32.partialorder %v5254_v57, %v3982_v39  ;;  %v2527_v33 = vsel %vm5256_vm3, %v3194_v51, 0.0 }
 0x62a   :  { %vm4611_vm12 = vmand %vm2321_vm5, %vm3985_vm2  ;;  %2522 = vadd.xlane.f32.xlu0 %v2521_v10  ;;  %vm2293_vm2 = vcmp.eq.f32.partialorder %v5257_v35, %v4327_v44 }
 0x62b   :  { %vm5255_vm6 = vmmov %vm5247_vm7  ;;  %vm2290_vm7 = vcmp.gt.f32.partialorder %v5254_v57, %v4042_v15  ;;  %v4666_v15 = vpop.permute.xlu0 %2075  ;;  %v4678_v14 = vpop.permute.xlu1 %2596 }
 0x62c   :  { %v2524_v8 = vsel %vm5255_vm6, %v3193_v58, 0.0  ;;  %vm2383_vm9 = vmor %vm2287_vm15, %vm2351_vm1  ;;  %vm2291_vm1 = vcmp.gt.f32.partialorder %v5254_v57, %v3982_v39 }
 0x62d   :  { %2525 = vadd.xlane.f32.xlu1 %v2524_v8  ;;  %vm2384_vm5 = vmor %vm2288_vm13, %vm2352_vm8  ;;  %v3196_v34 = vsel %vm2383_vm9, 1.0, %v3366_v41  ;;  %vm5259_vm13 = vnez %v5157_v50 }
 0x62e   :  { %vm2354_vm6 = vmand %vm2322_vm11, %vm3995_vm4  ;;  %2528 = vadd.xlane.f32.xlu0 %v2527_v33  ;;  %v3197_v30 = vsel %vm2384_vm5, 1.0, %v3366_v41  ;;  %vm2292_vm11 = vcmp.eq.f32.partialorder %v5257_v35, %v4430_v1 }
 0x62f   :  { %vm5258_vm0 = vmmov %vm5256_vm3  ;;  %v4720_v40 = vpop.permute.xlu1 %2600 }
 0x630   :  { %v2530_v31 = vsel %vm5258_vm0, %v3195_v23, 0.0  ;;  %vm2385_vm15 = vmor %vm2289_vm14, %vm4611_vm12  ;;  %vm2261_vm12 = vcmp.gt.f32.partialorder %v5257_v35, %v4327_v44 }
 0x631   :  { %vm2355_vm8 = vmand %vm2323_vm10, %vm5259_vm13  ;;  %2531 = vadd.xlane.f32.xlu1 %v2530_v31  ;;  %vm2296_vm10 = vcmp.eq.f32.partialorder %v5261_v3, %v4513_v59  ;;  %v3198_v47 = vsel %vm2385_vm15, 1.0, %v3366_v41 }
 0x632   :  { %vm2386_vm9 = vmor %vm2290_vm7, %vm2354_vm6  ;;  %vm2260_vm7 = vcmp.gt.f32.partialorder %v5257_v35, %v4430_v1  ;;  %v4700_v1 = vpop.permute.xlu0 %2086 }
 0x633   :  { %vm2325_vm14 = vmand %vm2293_vm2, %vm5259_vm13  ;;  %v3199_v44 = vsel %vm2386_vm9, 1.0, %v3366_v41  ;;  %vm2294_vm2 = vcmp.eq.f32.partialorder %v5263_v12, %v4471_v11  ;;  %v4752_v57 = vpop.permute.xlu1 %2611 }
 0x634   :  { %vm5260_vm3 = vmmov %vm5258_vm0 }
 0x635   :  { %v2533_v39 = vsel %vm5260_vm3, %v3196_v34, 0.0  ;;  %vm5262_vm5 = vmmov %vm5258_vm0 }
 0x636   :  { %2534 = vadd.xlane.f32.xlu0 %v2533_v39  ;;  %v2536_v0 = vsel %vm5262_vm5, %v3197_v30, 0.0  ;;  %vm2387_vm0 = vmor %vm2291_vm1, %vm2355_vm8  ;;  %vm2264_vm5 = vcmp.gt.f32.partialorder %v5261_v3, %v4513_v59  ;;  %vm5264_vm1 = vcmask 130048   ;;  %vm2298_vm8 = vcmp.eq.f32.partialorder %v5265_v53, %v4551_v26 }
 0x637   :  { %vm2324_vm6 = vmand %vm2292_vm11, %vm3995_vm4  ;;  %2537 = vadd.xlane.f32.xlu1 %v2536_v0  ;;  %v2539_v6 = vsel %vm5264_vm1, %v3198_v47, 0.0  ;;  %v3200_v7 = vsel %vm2387_vm0, 1.0, %v3366_v41  ;;  %v4784_v34 = vpop.permute.xlu1 %2622 }
 0x638   :  { %vm2357_vm3 = vmor %vm2261_vm12, %vm2325_vm14  ;;  %vm2295_vm12 = vcmp.eq.f32.partialorder %v5263_v12, %v4367_v48 }
 0x639   :  { %vm2328_vm15 = vmand %vm2296_vm10, %vm3995_vm4  ;;  %v3170_v62 = vsel %vm2357_vm3, 1.0, %v3366_v41  ;;  %vm2262_vm10 = vcmp.gt.f32.partialorder %v5263_v12, %v4471_v11  ;;  %vm2300_vm3 = vcmp.eq.f32.partialorder %v5272_v16, %v4595_v5 }
 0x63a   :  { %2540 = vadd.xlane.f32.xlu0 %v2539_v6  ;;  %vm5266_vm11 = vmmov %vm5264_vm1  ;;  %vm2266_vm1 = vcmp.gt.f32.partialorder %v5265_v53, %v4551_v26  ;;  %v4740_v26 = vpop.permute.xlu0 %2589 }
 0x63b   :  { %v2542_v2 = vsel %vm5266_vm11, %v3199_v44, 0.0  ;;  %vm2356_vm9 = vmor %vm2260_vm7, %vm2324_vm6  ;;  %v4806_v47 = vpop.permute.xlu1 %2633 }
 0x63c   :  { %vm4689_vm14 = vmand %vm2294_vm2, %vm3995_vm4  ;;  %2543 = vadd.xlane.f32.xlu1 %v2542_v2  ;;  %v3169_v9 = vsel %vm2356_vm9, 1.0, %v3366_v41  ;;  %vm2268_vm9 = vcmp.gt.f32.partialorder %v5272_v16, %v4595_v5 }
 0x63d   :  { %vm2360_vm0 = vmor %vm2264_vm5, %vm2328_vm15  ;;  %vm2263_vm15 = vcmp.gt.f32.partialorder %v5263_v12, %v4367_v48 }
 0x63e   :  { %vm2330_vm7 = vmand %vm2298_vm8, %vm3995_vm4  ;;  %v3173_v52 = vsel %vm2360_vm0, 1.0, %v3366_v41 }
 0x63f   :  { %vm5269_vm6 = vmmov %vm5266_vm11  ;;  %vm2297_vm11 = vcmp.eq.f32.partialorder %v5261_v3, %v4407_v55 }
 0x640   :  { %v2545_v43 = vsel %vm5269_vm6, %v3200_v7, 0.0  ;;  %vm4705_vm2 = vmand %vm2295_vm12, %vm5259_vm13 }
 0x641   :  { %2546 = vadd.xlane.f32.xlu0 %v2545_v43  ;;  %vm5273_vm5 = vmmov %vm5269_vm6 }
 0x642   :  { %v2455_v11 = vsel %vm5273_vm5, %v3170_v62, 0.0  ;;  %vm2358_vm8 = vmor %vm2262_vm10, %vm4689_vm14  ;;  %v2452_v48 = vsel %vm5273_vm5, %v3169_v9, 0.0  ;;  %vm2302_vm14 = vcmp.eq.f32.partialorder %v5274_v17, %v4632_v61 }
 0x643   :  { %2456 = vadd.xlane.f32.xlu1 %v2455_v11  ;;  %vm2362_vm12 = vmor %vm2266_vm1, %vm2330_vm7  ;;  %v3171_v58 = vsel %vm2358_vm8, 1.0, %v3366_v41  ;;  %vm2265_vm1 = vcmp.gt.f32.partialorder %v5261_v3, %v4407_v55  ;;  %vm2270_vm8 = vcmp.gt.f32.partialorder %v5274_v17, %v4632_v61  ;;  %v4770_v55 = vpop.permute.xlu0 %2607  ;;  %v5279_v61 = vld [vmem:[#allocation24_spill] sm:$0xff] }
 0x644   :  { %vm2332_vm6 = vmand %vm2300_vm3, %vm3995_vm4  ;;  %v3175_v5 = vsel %vm2362_vm12, 1.0, %v3366_v41  ;;  %vm2299_vm3 = vcmp.eq.f32.partialorder %v5265_v53, %v4447_v54 }
 0x645   :  { %2453 = vadd.xlane.f32.xlu0 %v2452_v48  ;;  %vm5275_vm10 = vmmov %vm5273_vm5 }
 0x646   :  { %v2464_v46 = vsel %vm5275_vm10, %v3173_v52, 0.0  ;;  %vm2359_vm0 = vmor %vm2263_vm15, %vm4705_vm2  ;;  %v2470_v8 = vsel %vm5275_vm10, %v3175_v5, 0.0  ;;  %v5290_v52 = vld [vmem:[#allocation26_spill] sm:$0xff] }
 0x647   :  { %vm2329_vm7 = vmand %vm2297_vm11, %vm5259_vm13  ;;  %2465 = vadd.xlane.f32.xlu1 %v2464_v46  ;;  %vm2304_vm11 = vcmp.eq.f32.partialorder %v5277_v63, %v4666_v15  ;;  %v3172_v51 = vsel %vm2359_vm0, 1.0, %v3366_v41  ;;  %vm2272_vm0 = vcmp.gt.f32.partialorder %v5277_v63, %v4666_v15  ;;  %v4798_v3 = vpop.permute.xlu0 %2618 }
 0x648   :  { %vm2364_vm5 = vmor %vm2268_vm9, %vm2332_vm6  ;;  %vm2267_vm9 = vcmp.gt.f32.partialorder %v5265_v53, %v4447_v54 }
 0x649   :  { %vm2334_vm2 = vmand %vm2302_vm14, %vm3995_vm4  ;;  %v3177_v23 = vsel %vm2364_vm5, 1.0, %v3366_v41  ;;  %vm2301_vm14 = vcmp.eq.f32.partialorder %v5272_v16, %v4491_v27 }
 0x64a   :  { %vm5276_vm15 = vmmov %vm5275_vm10 }
 0x64b   :  { %v2458_v10 = vsel %vm5276_vm15, %v3171_v58, 0.0  ;;  %vm2361_vm12 = vmor %vm2265_vm1, %vm2329_vm7  ;;  %2471 = vadd.xlane.f32.xlu1 %v2470_v8  ;;  %vm5278_vm1 = vcmask 130048   ;;  %vm2306_vm7 = vcmp.eq.f32.partialorder %v5279_v61, %v4700_v1  ;;  %v5291_v58 = vld [vmem:[#allocation28_spill] sm:$0xff] }
 0x64c   :  { %2459 = vadd.xlane.f32.xlu0 %v2458_v10  ;;  %vm2331_vm6 = vmand %vm2299_vm3, %vm5259_vm13  ;;  %v2461_v54 = vsel %vm5278_vm1, %v3172_v51, 0.0  ;;  %v3174_v35 = vsel %vm2361_vm12, 1.0, %v3366_v41  ;;  %vm2274_vm12 = vcmp.gt.f32.partialorder %v5279_v61, %v4700_v1 }
 0x64d   :  { %vm2366_vm15 = vmor %vm2270_vm8, %vm2334_vm2  ;;  %vm2269_vm8 = vcmp.gt.f32.partialorder %v5272_v16, %v4491_v27 }
 0x64e   :  { %vm2336_vm10 = vmand %vm2304_vm11, %vm3995_vm4  ;;  %v3179_v31 = vsel %vm2366_vm15, 1.0, %v3366_v41  ;;  %vm2303_vm11 = vcmp.eq.f32.partialorder %v5274_v17, %v4536_v38 }
 0x64f   :  { %vm5280_vm3 = vmmov %vm5278_vm1 }
 0x650   :  { %2462 = vadd.xlane.f32.xlu0 %v2461_v54  ;;  %v2476_v33 = vsel %vm5280_vm3, %v3177_v23, 0.0  ;;  %vm2363_vm5 = vmor %vm2267_vm9, %vm2331_vm6  ;;  %v5293_v54 = vld [vmem:[#allocation32_spill] sm:$0xff] }
 0x651   :  { %vm2333_vm2 = vmand %vm2301_vm14, %vm5259_vm13  ;;  %2477 = vadd.xlane.f32.xlu1 %v2476_v33  ;;  %v3176_v39 = vsel %vm2363_vm5, 1.0, %v3366_v41  ;;  %v5294_v33 = vld [vmem:[#allocation25_spill] sm:$0xff] }
 0x652   :  { %vm2368_vm1 = vmor %vm2272_vm0, %vm2336_vm10  ;;  %vm2271_vm0 = vcmp.gt.f32.partialorder %v5274_v17, %v4536_v38  ;;  %vm2305_vm10 = vcmp.eq.f32.partialorder %v5277_v63, %v4578_v21  ;;  %v4817_v38 = vpop.permute.xlu0 %2629 }
 0x653   :  { %vm2338_vm9 = vmand %vm2306_vm7, %vm3995_vm4  ;;  %v3181_v0 = vsel %vm2368_vm1, 1.0, %v3366_v41  ;;  %vm2307_vm1 = vcmp.eq.f32.partialorder %v5279_v61, %v4617_v25 }
 0x654   :  { %vm5281_vm6 = vmmov %vm5280_vm3 }
 0x655   :  { %v2467_v27 = vsel %vm5281_vm6, %v3174_v35, 0.0  ;;  %vm5282_vm14 = vmmov %vm5280_vm3 }
 0x656   :  { %2468 = vadd.xlane.f32.xlu0 %v2467_v27  ;;  %v2482_v30 = vsel %vm5282_vm14, %v3179_v31, 0.0  ;;  %vm2365_vm15 = vmor %vm2269_vm8, %vm2333_vm2  ;;  %vm2273_vm2 = vcmp.gt.f32.partialorder %v5277_v63, %v4578_v21  ;;  %vm2275_vm14 = vcmp.gt.f32.partialorder %v5279_v61, %v4617_v25  ;;  %v4826_v21 = vpop.permute.xlu1 %2644  ;;  %v4830_v62 = vpop.permute.xlu0 %2640  ;;  %v5292_v63 = vld [vmem:[#allocation30_spill] sm:$0xff] }
 0x657   :  { %vm2335_vm3 = vmand %vm2303_vm11, %vm5259_vm13  ;;  %2483 = vadd.xlane.f32.xlu1 %v2482_v30  ;;  %v3178_v44 = vsel %vm2365_vm15, 1.0, %v3366_v41  ;;  %v5295_v30 = vld [vmem:[#allocation34_spill] sm:$0xff] }
 0x658   :  { %vm2370_vm4 = vmor %vm2274_vm12, %vm2338_vm9 }
 0x659   :  { %vm5283_vm7 = vmmov %vm5281_vm6  ;;  %v3183_v12 = vsel %vm2370_vm4, 1.0, %v3366_v41 }
 0x65a   :  { %v2473_v49 = vsel %vm5283_vm7, %v3176_v39, 0.0  ;;  %vm5284_vm5 = vmmov %vm5281_vm6  ;;  %v4833_v43 = vpop.permute.xlu1 %2655  ;;  %v4836_v60 = vpop.permute.xlu0 %2651 }
 0x65b   :  { %2474 = vadd.xlane.f32.xlu0 %v2473_v49  ;;  %v2488_v15 = vsel %vm5284_vm5, %v3181_v0, 0.0  ;;  %vm2367_vm8 = vmor %vm2271_vm0, %vm2335_vm3  ;;  %v5296_v0 = vld [vmem:[#allocation27_spill] sm:$0xff] }
 0x65c   :  { %2489 = vadd.xlane.f32.xlu1 %v2488_v15  ;;  %vm2337_vm11 = vmand %vm2305_vm10, %vm5259_vm13  ;;  %v3180_v2 = vsel %vm2367_vm8, 1.0, %v3366_v41 }
 0x65d   :  { %vm5285_vm12 = vmmov %vm5284_vm5 }
 0x65e   :  { %v2479_v6 = vsel %vm5285_vm12, %v3178_v44, 0.0  ;;  %vm5286_vm9 = vmmov %vm5284_vm5  ;;  %v4839_v16 = vpop.permute.xlu1 %2666  ;;  %v4841_v11 = vpop.permute.xlu0 %2662 }
 0x65f   :  { %2480 = vadd.xlane.f32.xlu0 %v2479_v6  ;;  %v2494_v53 = vsel %vm5286_vm9, %v3183_v12, 0.0  ;;  %vm2369_vm6 = vmor %vm2273_vm2, %vm2337_vm11  ;;  %v5297_v12 = vld [vmem:[#allocation35_spill] sm:$0xff] }
 0x660   :  { %2495 = vadd.xlane.f32.xlu1 %v2494_v53  ;;  %vm2339_vm15 = vmand %vm2307_vm1, %vm5259_vm13  ;;  %v3182_v59 = vsel %vm2369_vm6, 1.0, %v3366_v41  ;;  %v5298_v53 = vld [vmem:[#allocation29_spill] sm:$0xff] }
 0x661   :  { %vm5287_vm3 = vmmov %vm5284_vm5 }
 0x662   :  { %v2485_v7 = vsel %vm5287_vm3, %v3180_v2, 0.0  ;;  %vm2371_vm0 = vmor %vm2275_vm14, %vm2339_vm15  ;;  %v1025_v9 = vpop.xlane.xlu1 %1024  ;;  %v1022_v17 = vpop.xlane.xlu0 %1021 }
 0x663   :  { %2486 = vadd.xlane.f32.xlu0 %v2485_v7  ;;  %vm5288_vm4 = vmmov %vm5287_vm3  ;;  %v3184_v25 = vsel %vm2371_vm0, 1.0, %v3366_v41  ;;  %vm1085_vm10 = vcmp.lt.f32.partialorder %v1025_v9, 12.0  ;;  %vm1084_vm8 = vcmp.lt.f32.partialorder %v1022_v17, 12.0  ;;  %v5301_v17 = vld [vmem:[#allocation40_spill] sm:$0xff] }
 0x664   :  { %v2491_v1 = vsel %vm5288_vm4, %v3182_v59, 0.0  ;;  %vm5289_vm13 = vmmov %vm5287_vm3  ;;  %v1325_v48 = vsel %vm1085_vm10, %v5290_v52, 0.0  ;;  %v1324_v35 = vsel %vm1084_vm8, %v5294_v33, 0.0  ;;  %v5305_v33 = vld [vmem:[#allocation37_spill] sm:$0xff] }
 0x665   :  { %v2497_v50 = vsel %vm5289_vm13, %v3184_v25, 0.0 }
 0x666   :  { %v1031_v46 = vpop.xlane.xlu1 %1030  ;;  %v1028_v41 = vpop.xlane.xlu0 %1027 }
 0x667   :  { %2492 = vadd.xlane.f32.xlu0 %v2491_v1  ;;  %vm1087_vm7 = vcmp.lt.f32.partialorder %v1031_v46, 12.0  ;;  %vm1086_vm11 = vcmp.lt.f32.partialorder %v1028_v41, 12.0  ;;  %v5299_v1 = vld [vmem:[#allocation38_spill] sm:$0xff] }
 0x668   :  { %v1327_v5 = vsel %vm1087_vm7, %v5291_v58, 0.0  ;;  %v1326_v49 = vsel %vm1086_vm11, %v5296_v0, 0.0  ;;  %v5302_v58 = vld [vmem:[#allocation33_spill] sm:$0xff]  ;;  %v5307_v0 = vld [vmem:[#allocation39_spill] sm:$0xff] }
 0x66a   :  { %v1037_v10 = vpop.xlane.xlu1 %1036  ;;  %v1034_v51 = vpop.xlane.xlu0 %1033 }
 0x66b   :  { %2498 = vadd.xlane.f32.xlu0 %v2497_v50  ;;  %vm1089_vm5 = vcmp.lt.f32.partialorder %v1037_v10, 12.0  ;;  %vm1088_vm12 = vcmp.lt.f32.partialorder %v1034_v51, 12.0  ;;  %v5300_v50 = vld [vmem:[#allocation31_spill] sm:$0xff]  ;;  %v5304_v51 = vld [vmem:[#allocation36_spill] sm:$0xff] }
 0x66c   :  { %v1329_v8 = vsel %vm1089_vm5, %v5292_v63, 0.0  ;;  %v1328_v2 = vsel %vm1088_vm12, %v5298_v53, 0.0  ;;  %v5303_v63 = vld [vmem:[#allocation43_spill] sm:$0xff]  ;;  %v5309_v53 = vld [vmem:[#allocation42_spill] sm:$0xff] }
 0x66e   :  { %v1043_v23 = vpop.xlane.xlu1 %1042  ;;  %v1040_v31 = vpop.xlane.xlu0 %1039 }
 0x66f   :  { %vm1091_vm2 = vcmp.lt.f32.partialorder %v1043_v23, 12.0  ;;  %vm1090_vm6 = vcmp.lt.f32.partialorder %v1040_v31, 12.0 }
 0x670   :  { %v1331_v61 = vsel %vm1091_vm2, %v5293_v54, 0.0  ;;  %v1330_v9 = vsel %vm1090_vm6, %v5300_v50, 0.0  ;;  %v5311_v50 = vld [vmem:[#allocation49_spill] sm:$0xff] }
 0x671   :  { %1424 = vperm.xlu1 %3279, %v1325_v48  }
 0x672   :  { %v1049_v27 = vpop.xlane.xlu1 %1048  ;;  %v1046_v15 = vpop.xlane.xlu0 %1045 }
 0x673   :  { %vm1093_vm1 = vcmp.lt.f32.partialorder %v1049_v27, 12.0  ;;  %vm1092_vm15 = vcmp.lt.f32.partialorder %v1046_v15, 12.0 }
 0x674   :  { %v1333_v39 = vsel %vm1093_vm1, %v5295_v30, 0.0  ;;  %v5306_v30 = vld [vmem:[#allocation45_spill] sm:$0xff] }
 0x675   :  { %1430 = vperm.xlu1 %3279, %v1327_v5   ;;  %v1332_v5 = vsel %vm1092_vm15, %v5302_v58, 0.0  ;;  %v5313_v58 = vld [vmem:[#allocation44_spill] sm:$0xff] }
 0x676   :  { %v1055_v44 = vpop.xlane.xlu1 %1054  ;;  %v1052_v7 = vpop.xlane.xlu0 %1051 }
 0x677   :  { %vm1095_vm9 = vcmp.lt.f32.partialorder %v1055_v44, 12.0  ;;  %vm1094_vm0 = vcmp.lt.f32.partialorder %v1052_v7, 12.0 }
 0x678   :  { %v1335_v6 = vsel %vm1095_vm9, %v5297_v12, 0.0  ;;  %v1334_v23 = vsel %vm1094_vm0, %v5304_v51, 0.0  ;;  %v5308_v12 = vld [vmem:[#allocation47_spill] sm:$0xff]  ;;  %v5315_v51 = vld [vmem:[#allocation46_spill] sm:$0xff] }
 0x679   :  { %1436 = vperm.xlu1 %3279, %v1329_v8  }
 0x67a   :  { %v1061_v59 = vpop.xlane.xlu1 %1060  ;;  %v1058_v52 = vpop.xlane.xlu0 %1057 }
 0x67b   :  { %vm1097_vm14 = vcmp.lt.f32.partialorder %v1061_v59, 12.0  ;;  %vm1096_vm13 = vcmp.lt.f32.partialorder %v1058_v52, 12.0 }
 0x67c   :  { %v1337_v25 = vsel %vm1097_vm14, %v5299_v1, 0.0  ;;  %v5310_v1 = vld [vmem:[#allocation51_spill] sm:$0xff] }
 0x67d   :  { %1442 = vperm.xlu1 %3279, %v1331_v61  }
 0x67e   :  { %v1067_v48 = vpop.xlane.xlu1 %1066  ;;  %v1064_v41 = vpop.xlane.xlu0 %1063 }
 0x67f   :  { %vm1099_vm3 = vcmp.lt.f32.partialorder %v1067_v48, 12.0  ;;  %vm1098_vm10 = vcmp.lt.f32.partialorder %v1064_v41, 12.0 }
 0x680   :  { %v1339_v46 = vsel %vm1099_vm3, %v5301_v17, 0.0  ;;  %v5312_v17 = vld [vmem:[#allocation53_spill] sm:$0xff] }
 0x681   :  { %1421 = vperm.xlu0 %3278, %v1324_v35   ;;  %1448 = vperm.xlu1 %3279, %v1333_v39   ;;  %v1336_v35 = vsel %vm1096_vm13, %v5305_v33, 0.0  ;;  %v5316_v33 = vld [vmem:[#allocation55_spill] sm:$0xff] }
 0x682   :  { %v974_v10 = vpop.xlane.xlu1 %973  ;;  %v977_v54 = vpop.xlane.xlu0 %976 }
 0x683   :  { %vm1068_vm4 = vcmp.lt.f32.partialorder %v974_v10, 12.0  ;;  %vm1069_vm8 = vcmp.lt.f32.partialorder %v977_v54, 12.0 }
 0x684   :  { %v1308_v8 = vsel %vm1068_vm4, %v5303_v63, 0.0  ;;  %v5314_v63 = vld [vmem:[#allocation54_spill] sm:$0xff] }
 0x685   :  { %1427 = vperm.xlu0 %3278, %v1326_v49   ;;  %1454 = vperm.xlu1 %3279, %v1335_v6   ;;  %v1338_v49 = vsel %vm1098_vm10, %v5307_v0, 0.0  ;;  %v5318_v0 = vld [vmem:[#allocation56_spill] sm:$0xff] }
 0x686   :  { %v983_v61 = vpop.xlane.xlu1 %982  ;;  %v980_v31 = vpop.xlane.xlu0 %979 }
 0x687   :  { %vm1070_vm7 = vcmp.lt.f32.partialorder %v980_v31, 12.0  ;;  %vm1071_vm5 = vcmp.lt.f32.partialorder %v983_v61, 12.0  ;;  %v5317_v31 = vld [vmem:[#allocation48_spill] sm:$0xff] }
 0x688   :  { %v1310_v39 = vsel %vm1070_vm7, %v5306_v30, 0.0  ;;  %v1311_v6 = vsel %vm1071_vm5, %v5308_v12, 0.0 }
 0x689   :  { %1433 = vperm.xlu0 %3278, %v1328_v2   ;;  %1460 = vperm.xlu1 %3279, %v1337_v25   ;;  %v1309_v2 = vsel %vm1069_vm8, %v5309_v53, 0.0  ;;  %v5320_v53 = vld [vmem:[#allocation58_spill] sm:$0xff] }
 0x68a   :  { %v989_v27 = vpop.xlane.xlu1 %988  ;;  %v986_v15 = vpop.xlane.xlu0 %985 }
 0x68b   :  { %vm1073_vm2 = vcmp.lt.f32.partialorder %v989_v27, 12.0  ;;  %vm1072_vm11 = vcmp.lt.f32.partialorder %v986_v15, 12.0  ;;  %v5319_v15 = vld [vmem:[#allocation50_spill] sm:$0xff] }
 0x68c   :  { %v1313_v25 = vsel %vm1073_vm2, %v5310_v1, 0.0 }
 0x68d   :  { %1439 = vperm.xlu0 %3278, %v1330_v9   ;;  %1466 = vperm.xlu1 %3279, %v1339_v46   ;;  %v1312_v9 = vsel %vm1072_vm11, %v5311_v50, 0.0 }
 0x68e   :  { %v995_v44 = vpop.xlane.xlu1 %994  ;;  %v992_v7 = vpop.xlane.xlu0 %991 }
 0x68f   :  { %vm1075_vm1 = vcmp.lt.f32.partialorder %v995_v44, 12.0  ;;  %vm1074_vm12 = vcmp.lt.f32.partialorder %v992_v7, 12.0  ;;  %v5321_v7 = vld [vmem:[#allocation52_spill] sm:$0xff] }
 0x690   :  { %v1315_v46 = vsel %vm1075_vm1, %v5312_v17, 0.0  ;;  %v5322_v17 = vld [vmem:[#allocation61_spill] sm:$0xff] }
 0x691   :  { %1445 = vperm.xlu0 %3278, %v1332_v5   ;;  %1373 = vperm.xlu1 %3279, %v1308_v8   ;;  %v1314_v5 = vsel %vm1074_vm12, %v5313_v58, 0.0 }
 0x692   :  { %v1001_v59 = vpop.xlane.xlu1 %1000  ;;  %v998_v52 = vpop.xlane.xlu0 %997 }
 0x693   :  { %vm1077_vm9 = vcmp.lt.f32.partialorder %v1001_v59, 12.0  ;;  %vm1076_vm6 = vcmp.lt.f32.partialorder %v998_v52, 12.0 }
 0x694   :  { %v1317_v8 = vsel %vm1077_vm9, %v5314_v63, 0.0 }
 0x695   :  { %1451 = vperm.xlu0 %3278, %v1334_v23   ;;  %1379 = vperm.xlu1 %3279, %v1310_v39   ;;  %v1316_v23 = vsel %vm1076_vm6, %v5315_v51, 0.0 }
 0x696   :  { %v1007_v48 = vpop.xlane.xlu1 %1006  ;;  %v1004_v41 = vpop.xlane.xlu0 %1003 }
 0x697   :  { %vm1079_vm14 = vcmp.lt.f32.partialorder %v1007_v48, 12.0  ;;  %vm1078_vm15 = vcmp.lt.f32.partialorder %v1004_v41, 12.0 }
 0x698   :  { %v1318_v27 = vsel %vm1078_vm15, %v5317_v31, 0.0 }
 0x699   :  { %1457 = vperm.xlu0 %3278, %v1336_v35   ;;  %1382 = vperm.xlu1 %3279, %v1311_v6   ;;  %v1319_v35 = vsel %vm1079_vm14, %v5316_v33, 0.0 }
 0x69a   :  { %v1013_v10 = vpop.xlane.xlu1 %1012  ;;  %v1010_v54 = vpop.xlane.xlu0 %1009 }
 0x69b   :  { %vm1081_vm3 = vcmp.lt.f32.partialorder %v1013_v10, 12.0  ;;  %vm1080_vm0 = vcmp.lt.f32.partialorder %v1010_v54, 12.0  ;;  %v5323_v10 = vld [vmem:[#allocation62_spill] sm:$0xff] }
 0x69c   :  { %v1320_v44 = vsel %vm1080_vm0, %v5319_v15, 0.0 }
 0x69d   :  { %1463 = vperm.xlu0 %3278, %v1338_v49   ;;  %1388 = vperm.xlu1 %3279, %v1313_v25   ;;  %v1321_v49 = vsel %vm1081_vm3, %v5318_v0, 0.0 }
 0x69e   :  { %v1019_v61 = vpop.xlane.xlu1 %1018  ;;  %v1016_v30 = vpop.xlane.xlu0 %1015 }
 0x69f   :  { %vm1083_vm4 = vcmp.lt.f32.partialorder %v1019_v61, 12.0  ;;  %vm1082_vm13 = vcmp.lt.f32.partialorder %v1016_v30, 12.0 }
 0x6a0   :  { %v1322_v59 = vsel %vm1082_vm13, %v5321_v7, 0.0 }
 0x6a1   :  { %1376 = vperm.xlu0 %3278, %v1309_v2   ;;  %1394 = vperm.xlu1 %3279, %v1315_v46   ;;  %v1323_v2 = vsel %vm1083_vm4, %v5320_v53, 0.0 }
 0x6a2   :  { %v2505_v39 = vpop.xlane.xlu1 %2504 }
 0x6a3   :  { %vm2565_vm10 = vcmp.lt.f32.partialorder %v2505_v39, 12.0 }
 0x6a4   :  { %v2502_v12 = vpop.xlane.xlu0 %2501  ;;  %v2805_v50 = vsel %vm2565_vm10, %v4005_v37, 0.0 }
 0x6a5   :  { %1385 = vperm.xlu0 %3278, %v1312_v9   ;;  %1400 = vperm.xlu1 %3279, %v1317_v8   ;;  %vm2564_vm7 = vcmp.lt.f32.partialorder %v2502_v12, 12.0 }
 0x6a6   :  { %v2804_v9 = vsel %vm2564_vm7, %v4082_v24, 0.0 }
 0x6a7   :  { %v2511_v6 = vpop.xlane.xlu1 %2510 }
 0x6a8   :  { %v2508_v1 = vpop.xlane.xlu0 %2507  ;;  %vm2567_vm5 = vcmp.lt.f32.partialorder %v2511_v6, 12.0 }
 0x6a9   :  { %1391 = vperm.xlu0 %3278, %v1314_v5   ;;  %1406 = vperm.xlu1 %3279, %v1319_v35   ;;  %vm2566_vm8 = vcmp.lt.f32.partialorder %v2508_v1, 12.0  ;;  %v2807_v46 = vsel %vm2567_vm5, %v5322_v17, 0.0 }
 0x6aa   :  { %v2806_v58 = vsel %vm2566_vm8, %v4118_v18, 0.0 }
 0x6ac   :  { %v2514_v25 = vpop.xlane.xlu1 %2513 }
 0x6ad   :  { %1397 = vperm.xlu0 %3278, %v1316_v23   ;;  %1412 = vperm.xlu1 %3279, %v1321_v49   ;;  %vm2568_vm11 = vcmp.lt.f32.partialorder %v2514_v25, 12.0 }
 0x6ae   :  { %v2808_v24 = vsel %vm2568_vm11, %v4182_v28, 0.0 }
 0x6af   :  { %v2517_v52 = vpop.xlane.xlu0 %2516 }
 0x6b0   :  { %v2520_v48 = vpop.xlane.xlu1 %2519  ;;  %vm2569_vm2 = vcmp.lt.f32.partialorder %v2517_v52, 12.0 }
 0x6b1   :  { %1403 = vperm.xlu0 %3278, %v1318_v27   ;;  %1418 = vperm.xlu1 %3279, %v1323_v2   ;;  %v2809_v37 = vsel %vm2569_vm2, %v5323_v10, 0.0  ;;  %vm2570_vm12 = vcmp.lt.f32.partialorder %v2520_v48, 12.0 }
 0x6b2   :  { %v2810_v18 = vsel %vm2570_vm12, %v4222_v19, 0.0 }
 0x6b3   :  { %v2523_v5 = vpop.xlane.xlu0 %2522 }
 0x6b4   :  { %vm2571_vm1 = vcmp.lt.f32.partialorder %v2523_v5, 12.0 }
 0x6b5   :  { %1409 = vperm.xlu0 %3278, %v1320_v44   ;;  %2904 = vperm.xlu1 %3279, %v2805_v50   ;;  %v2811_v51 = vsel %vm2571_vm1, %v4103_v22, 0.0 }
 0x6b6   :  { %v2526_v41 = vpop.xlane.xlu1 %2525 }
 0x6b7   :  { %v2529_v63 = vpop.xlane.xlu0 %2528  ;;  %vm2572_vm6 = vcmp.lt.f32.partialorder %v2526_v41, 12.0 }
 0x6b8   :  { %vm2573_vm9 = vcmp.lt.f32.partialorder %v2529_v63, 12.0  ;;  %v2812_v28 = vsel %vm2572_vm6, %v4266_v45, 0.0 }
 0x6b9   :  { %1415 = vperm.xlu0 %3278, %v1322_v59   ;;  %2910 = vperm.xlu1 %3279, %v2807_v46   ;;  %v2813_v61 = vsel %vm2573_vm9, %v4158_v20, 0.0 }
 0x6ba   :  { %v2532_v8 = vpop.xlane.xlu1 %2531 }
 0x6bb   :  { %vm2574_vm15 = vcmp.lt.f32.partialorder %v2532_v8, 12.0 }
 0x6bc   :  { %v2814_v19 = vsel %vm2574_vm15, %v4302_v42, 0.0 }
 0x6bd   :  { %2901 = vperm.xlu0 %3278, %v2804_v9   ;;  %2916 = vperm.xlu1 %3279, %v2809_v37  }
 0x6bf   :  { %v2535_v23 = vpop.xlane.xlu0 %2534 }
 0x6c0   :  { %v2538_v54 = vpop.xlane.xlu1 %2537  ;;  %vm2575_vm14 = vcmp.lt.f32.partialorder %v2535_v23, 12.0 }
 0x6c1   :  { %2907 = vperm.xlu0 %3278, %v2806_v58   ;;  %2922 = vperm.xlu1 %3279, %v2811_v51   ;;  %v2815_v22 = vsel %vm2575_vm14, %v4207_v32, 0.0  ;;  %vm2576_vm0 = vcmp.lt.f32.partialorder %v2538_v54, 12.0  ;;  %v5325_v51 = vld [vmem:[#allocation8_spill] sm:$0xff] }
 0x6c2   :  { %v2816_v45 = vsel %vm2576_vm0, %v4346_v4, 0.0 }
 0x6c3   :  { %v2541_v33 = vpop.xlane.xlu0 %2540 }
 0x6c4   :  { %vm2577_vm3 = vcmp.lt.f32.partialorder %v2541_v33, 12.0 }
 0x6c5   :  { %2913 = vperm.xlu0 %3278, %v2808_v24   ;;  %2928 = vperm.xlu1 %3279, %v2813_v61   ;;  %v4885_v35 = vpop.xlane.xlu1 %2543  ;;  %v2817_v20 = vsel %vm2577_vm3, %v4247_v13, 0.0  ;;  %v5324_v24 = vld [vmem:[#allocation60_spill] sm:$0xff] }
 0x6c6   :  { %vm2578_vm0 = vcmp.lt.f32.partialorder %v4885_v35, 12.0 }
 0x6c7   :  { %v2818_v48 = vsel %vm2578_vm0, %v4382_v29, 0.0 }
 0x6c9   :  { %2919 = vperm.xlu0 %3278, %v2810_v18   ;;  %2934 = vperm.xlu1 %3279, %v2815_v22   ;;  %v4916_v18 = vsub.s32 %v5324_v24, %v5325_v51 }
 0x6ca   :  { %v4889_v31 = vpop.xlane.xlu0 %2546 }
 0x6cc   :  { %v2457_v27 = vpop.xlane.xlu1 %2456 }
 0x6cd   :  { %2925 = vperm.xlu0 %3278, %v2812_v28   ;;  %vm2549_vm4 = vcmp.lt.f32.partialorder %v2457_v27, 12.0  ;;  %2940 = vperm.xlu1 %3279, %v2817_v20  }
 0x6ce   :  { %v2454_v30 = vpop.xlane.xlu0 %2453  ;;  %v2789_v32 = vsel %vm2549_vm4, %v4740_v26, 0.0 }
 0x6cf   :  { %vm2548_vm13 = vcmp.lt.f32.partialorder %v2454_v30, 12.0 }
 0x6d0   :  { %v2466_v39 = vpop.xlane.xlu1 %2465  ;;  %v2788_v42 = vsel %vm2548_vm13, %v4648_v56, 0.0  ;;  %vm2579_vm13 = vcmp.lt.f32.partialorder %v4889_v31, 12.0 }
 0x6d1   :  { %2931 = vperm.xlu0 %3278, %v2814_v19   ;;  %2856 = vperm.xlu1 %3279, %v2789_v32   ;;  %vm2552_vm7 = vcmp.lt.f32.partialorder %v2466_v39, 12.0 }
 0x6d2   :  { %v2792_v12 = vsel %vm2552_vm7, %v4770_v55, 0.0  ;;  %vm1614_vm7 = vcmask 1041409  }
 0x6d4   :  { %v2472_v49 = vpop.xlane.xlu1 %2471 }
 0x6d5   :  { %2937 = vperm.xlu0 %3278, %v2816_v45   ;;  %v2460_v0 = vpop.xlane.xlu0 %2459  ;;  %vm2554_vm8 = vcmp.lt.f32.partialorder %v2472_v49, 12.0 }
 0x6d6   :  { %vm2550_vm10 = vcmp.lt.f32.partialorder %v2460_v0, 12.0 }
 0x6d7   :  { %v2790_v15 = vsel %vm2550_vm10, %v4678_v14, 0.0  ;;  %v2794_v14 = vsel %vm2554_vm8, %v4798_v3, 0.0  ;;  %vm1477_vm10 = vcmask 130112   ;;  %vm1618_vm8 = vcmask 1043459  }
 0x6d9   :  { %2853 = vperm.xlu0 %3278, %v2788_v42   ;;  %v2463_v13 = vpop.xlane.xlu0 %2462 }
 0x6da   :  { %vm2551_vm5 = vcmp.lt.f32.partialorder %v2463_v13, 12.0  ;;  %v2478_v44 = vpop.xlane.xlu1 %2477 }
 0x6db   :  { %v2791_v4 = vsel %vm2551_vm5, %v4720_v40, 0.0  ;;  %vm2556_vm11 = vcmp.lt.f32.partialorder %v2478_v44, 12.0  ;;  %vm1616_vm5 = vcmask 1042434  }
 0x6dc   :  { %2862 = vperm.xlu1 %3279, %v2791_v4   ;;  %v2796_v55 = vsel %vm2556_vm11, %v4817_v38, 0.0  ;;  %vm1622_vm11 = vcmask 1045509  }
 0x6dd   :  { %2859 = vperm.xlu0 %3278, %v2790_v15  }
 0x6df   :  { %v2469_v26 = vpop.xlane.xlu0 %2468 }
 0x6e0   :  { %vm2553_vm2 = vcmp.lt.f32.partialorder %v2469_v26, 12.0  ;;  %v2484_v56 = vpop.xlane.xlu1 %2483 }
 0x6e1   :  { %2865 = vperm.xlu0 %3278, %v2792_v12   ;;  %v2793_v6 = vsel %vm2553_vm2, %v4752_v57, 0.0  ;;  %vm2558_vm12 = vcmp.lt.f32.partialorder %v2484_v56, 12.0  ;;  %vm1620_vm2 = vcmask 1044484  }
 0x6e2   :  { %2868 = vperm.xlu1 %3279, %v2793_v6   ;;  %v2798_v3 = vsel %vm2558_vm12, %v4830_v62, 0.0  ;;  %vm1626_vm12 = vcmask 1047559  }
 0x6e4   :  { %v2475_v53 = vpop.xlane.xlu0 %2474 }
 0x6e5   :  { %vm2555_vm1 = vcmp.lt.f32.partialorder %v2475_v53, 12.0  ;;  %v2490_v2 = vpop.xlane.xlu1 %2489  ;;  %2871 = vperm.xlu0 %3278, %v2794_v14  }
 0x6e6   :  { %v2795_v40 = vsel %vm2555_vm1, %v4784_v34, 0.0  ;;  %vm2560_vm6 = vcmp.lt.f32.partialorder %v2490_v2, 12.0  ;;  %vm1624_vm1 = vcmask 1046534  }
 0x6e7   :  { %2874 = vperm.xlu1 %3279, %v2795_v40   ;;  %v2800_v38 = vsel %vm2560_vm6, %v4836_v60, 0.0 }
 0x6e8   :  { %v2481_v7 = vpop.xlane.xlu0 %2480 }
 0x6e9   :  { %vm2557_vm9 = vcmp.lt.f32.partialorder %v2481_v7, 12.0  ;;  %2877 = vperm.xlu0 %3278, %v2796_v55   ;;  %v2496_v57 = vpop.xlane.xlu1 %2495 }
 0x6ea   :  { %v2797_v59 = vsel %vm2557_vm9, %v4806_v47, 0.0  ;;  %vm2562_vm15 = vcmp.lt.f32.partialorder %v2496_v57, 12.0  ;;  %vm5326_vm9 = vcmask 130048  }
 0x6eb   :  { %2880 = vperm.xlu1 %3279, %v2797_v59   ;;  %v2802_v62 = vsel %vm2562_vm15, %v4841_v11, 0.0  ;;  %vm5327_vm6 = vmmov %vm5326_vm9 }
 0x6ec   :  { %v2487_v1 = vpop.xlane.xlu0 %2486  ;;  %vm5329_vm15 = vmmov %vm5327_vm6 }
 0x6ed   :  { %vm2559_vm14 = vcmp.lt.f32.partialorder %v2487_v1, 12.0  ;;  %2883 = vperm.xlu0 %3278, %v2798_v3   ;;  %v1425_v34 = vpop.permute.xlu1 %1424 }
 0x6ee   :  { %v2799_v25 = vsel %vm2559_vm14, %v4826_v21, 0.0  ;;  %vm5328_vm14 = vmmov %vm5327_vm6 }
 0x6ef   :  { %2886 = vperm.xlu1 %3279, %v2799_v25  }
 0x6f0   :  { %v2493_v50 = vpop.xlane.xlu0 %2492 }
 0x6f1   :  { %vm2561_vm3 = vcmp.lt.f32.partialorder %v2493_v50, 12.0  ;;  %2889 = vperm.xlu0 %3278, %v2800_v38   ;;  %v1431_v9 = vpop.permute.xlu1 %1430 }
 0x6f2   :  { %v2801_v47 = vsel %vm2561_vm3, %v4833_v43, 0.0  ;;  %v2819_v43 = vsel %vm2579_vm13, %v4287_v36, 0.0 }
 0x6f3   :  { %2892 = vperm.xlu1 %3279, %v2801_v47  }
 0x6f4   :  { %v2499_v52 = vpop.xlane.xlu0 %2498 }
 0x6f5   :  { %vm2563_vm4 = vcmp.lt.f32.partialorder %v2499_v52, 12.0  ;;  %2895 = vperm.xlu0 %3278, %v2802_v62   ;;  %v1437_v60 = vpop.permute.xlu1 %1436 }
 0x6f6   :  { %v2803_v21 = vsel %vm2563_vm4, %v4839_v16, 0.0  ;;  %v1472_v16 = vadd.s32 4294967288, %v5324_v24 }
 0x6f7   :  { %2898 = vperm.xlu1 %3279, %v2803_v21  }
 0x6f8   :  { %v4919_v29 = vsub.s32 %v1472_v16, %v5325_v51 }
 0x6f9   :  { %2943 = vperm.xlu0 %3278, %v2818_v48   ;;  %v1443_v17 = vpop.permute.xlu1 %1442 }
 0x6fa   :  { %v1558_v61 = vrot.slane %v1431_v9, %v4919_v29  ;;  %v1567_v35 = vrot.slane %v1437_v60, %v4919_v29  ;;  %v1549_v31 = vrot.slane %v1425_v34, %v4919_v29  ;;  %v1576_v27 = vrot.slane %v1443_v17, %v4919_v29 }
 0x6fb   :  { %2946 = vperm.xlu1 %3279, %v2819_v43  }
 0x6fc   :  { %v1422_v46 = vpop.permute.xlu0 %1421 }
 0x6fd   :  { %v1449_v11 = vpop.permute.xlu1 %1448  ;;  %v1545_v28 = vrot.slane %v1422_v46, %v4916_v18 }
 0x6fe   :  { %v1585_v30 = vrot.slane %v1449_v11, %v4919_v29 }
 0x6ff   :  { %v1550_v42 = vsel %vm1477_vm10, %v1549_v31, %v1545_v28 }
 0x700   :  { %v1428_v58 = vpop.permute.xlu0 %1427 }
 0x701   :  { %v1455_v5 = vpop.permute.xlu1 %1454  ;;  %v1554_v36 = vrot.slane %v1428_v58, %v4916_v18 }
 0x702   :  { %v1594_v0 = vrot.slane %v1455_v5, %v4919_v29 }
 0x703   :  { %v1559_v20 = vsel %vm1477_vm10, %v1558_v61, %v1554_v36 }
 0x704   :  { %v1434_v41 = vpop.permute.xlu0 %1433  ;;  %v1628_v13 = vsel %vm1614_vm7, %v1559_v20, %v1550_v42 }
 0x705   :  { %v1461_v10 = vpop.permute.xlu1 %1460  ;;  %v1563_v23 = vrot.slane %v1434_v41, %v4916_v18 }
 0x706   :  { %v1603_v44 = vrot.slane %v1461_v10, %v4919_v29 }
 0x707   :  { %v1568_v39 = vsel %vm1477_vm10, %v1567_v35, %v1563_v23 }
 0x708   :  { %v1440_v37 = vpop.permute.xlu0 %1439  ;;  %v1629_v26 = vsel %vm1616_vm5, %v1568_v39, %v1628_v13 }
 0x709   :  { %v1467_v63 = vpop.permute.xlu1 %1466  ;;  %v1572_v33 = vrot.slane %v1440_v37, %v4916_v18 }
 0x70a   :  { %v1612_v2 = vrot.slane %v1467_v63, %v4919_v29 }
 0x70b   :  { %v1577_v49 = vsel %vm1477_vm10, %v1576_v27, %v1572_v33 }
 0x70c   :  { %v1446_v8 = vpop.permute.xlu0 %1445  ;;  %v1630_v6 = vsel %vm1618_vm8, %v1577_v49, %v1629_v26 }
 0x70d   :  { %v1581_v22 = vrot.slane %v1446_v8, %v4916_v18  ;;  %v1374_v19 = vpop.permute.xlu1 %1373 }
 0x70e   :  { %v1471_v43 = vrot.slane %v1374_v19, %v4916_v18 }
 0x70f   :  { %v1586_v4 = vsel %vm1477_vm10, %v1585_v30, %v1581_v22 }
 0x710   :  { %v1452_v54 = vpop.permute.xlu0 %1451  ;;  %v1631_v40 = vsel %vm1620_vm2, %v1586_v4, %v1630_v6 }
 0x711   :  { %v1590_v45 = vrot.slane %v1452_v54, %v4916_v18  ;;  %v1380_v12 = vpop.permute.xlu1 %1379 }
 0x712   :  { %v1482_v41 = vrot.slane %v1380_v12, %v4916_v18 }
 0x713   :  { %v1595_v56 = vsel %vm1477_vm10, %v1594_v0, %v1590_v45 }
 0x714   :  { %v1458_v32 = vpop.permute.xlu0 %1457  ;;  %v1632_v7 = vsel %vm1622_vm11, %v1595_v56, %v1631_v40 }
 0x715   :  { %v1599_v15 = vrot.slane %v1458_v32, %v4916_v18  ;;  %v1383_v59 = vpop.permute.xlu1 %1382 }
 0x716   :  { %v1486_v17 = vrot.slane %v1383_v59, %v4919_v29 }
 0x717   :  { %v1604_v14 = vsel %vm1477_vm10, %v1603_v44, %v1599_v15 }
 0x718   :  { %v1464_v53 = vpop.permute.xlu0 %1463  ;;  %v1633_v57 = vsel %vm1624_vm1, %v1604_v14, %v1632_v7  ;;  %v1487_v51 = vsel %vm1477_vm10, %v1486_v17, %v1482_v41 }
 0x719   :  { %v1608_v55 = vrot.slane %v1464_v53, %v4916_v18  ;;  %v1389_v34 = vpop.permute.xlu1 %1388 }
 0x71a   :  { %v1495_v11 = vrot.slane %v1389_v34, %v4919_v29 }
 0x71b   :  { %v1613_v3 = vsel %vm1477_vm10, %v1612_v2, %v1608_v55 }
 0x71c   :  { %v1634_v1 = vsel %vm1626_vm12, %v1613_v3, %v1633_v57  ;;  %v1377_v25 = vpop.permute.xlu0 %1376 }
 0x71d   :  { %1638 = vst.msk [vmem:[#allocation5 + $0x8] sm:$0xff] %vm5326_vm9, %v1634_v1  ;;  %v1395_v50 = vpop.permute.xlu1 %1394  ;;  %v1476_v21 = vrot.slane %v1377_v25, %v4919_v29 }
 0x71e   :  { %v1504_v37 = vrot.slane %v1395_v50, %v4919_v29 }
 0x71f   :  { %v1478_v10 = vsel %vm1477_vm10, %v1476_v21, %v1471_v43 }
 0x720   :  { %v1386_v38 = vpop.permute.xlu0 %1385  ;;  %v1615_v61 = vsel %vm1614_vm7, %v1487_v51, %v1478_v10 }
 0x721   :  { %v1401_v9 = vpop.permute.xlu1 %1400  ;;  %v1491_v60 = vrot.slane %v1386_v38, %v4916_v18 }
 0x722   :  { %v1513_v63 = vrot.slane %v1401_v9, %v4919_v29 }
 0x723   :  { %v1496_v16 = vsel %vm1477_vm10, %v1495_v11, %v1491_v60 }
 0x724   :  { %v1392_v47 = vpop.permute.xlu0 %1391  ;;  %v1617_v22 = vsel %vm1616_vm5, %v1496_v16, %v1615_v61 }
 0x725   :  { %v1407_v52 = vpop.permute.xlu1 %1406  ;;  %v1500_v46 = vrot.slane %v1392_v47, %v4916_v18 }
 0x726   :  { %v1522_v23 = vrot.slane %v1407_v52, %v4919_v29 }
 0x727   :  { %v1505_v36 = vsel %vm1477_vm10, %v1504_v37, %v1500_v46 }
 0x728   :  { %v1398_v62 = vpop.permute.xlu0 %1397  ;;  %v1619_v31 = vsel %vm1618_vm8, %v1505_v36, %v1617_v22 }
 0x729   :  { %v1509_v58 = vrot.slane %v1398_v62, %v4916_v18  ;;  %v1413_v5 = vpop.permute.xlu1 %1412 }
 0x72a   :  { %v1531_v33 = vrot.slane %v1413_v5, %v4919_v29 }
 0x72b   :  { %v1514_v28 = vsel %vm1477_vm10, %v1513_v63, %v1509_v58 }
 0x72c   :  { %v1404_v48 = vpop.permute.xlu0 %1403  ;;  %v1621_v45 = vsel %vm1620_vm2, %v1514_v28, %v1619_v31 }
 0x72d   :  { %v1518_v24 = vrot.slane %v1404_v48, %v4916_v18  ;;  %v1419_v35 = vpop.permute.xlu1 %1418 }
 0x72e   :  { %v1540_v30 = vrot.slane %v1419_v35, %v4919_v29 }
 0x72f   :  { %v1523_v19 = vsel %vm1477_vm10, %v1522_v23, %v1518_v24 }
 0x730   :  { %v1410_v8 = vpop.permute.xlu0 %1409  ;;  %v1623_v32 = vsel %vm1622_vm11, %v1523_v19, %v1621_v45 }
 0x731   :  { %v1527_v54 = vrot.slane %v1410_v8, %v4916_v18  ;;  %v2905_v42 = vpop.permute.xlu1 %2904 }
 0x732   :  { %v3027_v21 = vrot.slane %v2905_v42, %v4919_v29 }
 0x733   :  { %v1532_v27 = vsel %vm1477_vm10, %v1531_v33, %v1527_v54 }
 0x734   :  { %v1416_v20 = vpop.permute.xlu0 %1415  ;;  %v1625_v0 = vsel %vm1624_vm1, %v1532_v27, %v1623_v32 }
 0x735   :  { %v1536_v39 = vrot.slane %v1416_v20, %v4916_v18  ;;  %v2911_v44 = vpop.permute.xlu1 %2910 }
 0x736   :  { %v3036_v48 = vrot.slane %v2911_v44, %v4919_v29 }
 0x737   :  { %v1541_v49 = vsel %vm1477_vm10, %v1540_v30, %v1536_v39 }
 0x738   :  { %v1627_v15 = vsel %vm1626_vm12, %v1541_v49, %v1625_v0  ;;  %v2902_v13 = vpop.permute.xlu0 %2901 }
 0x739   :  { %1637 = vst.msk [vmem:[#allocation5] sm:$0xff] %vm5327_vm6, %v1627_v15  ;;  %v2917_v12 = vpop.permute.xlu1 %2916  ;;  %v3023_v9 = vrot.slane %v2902_v13, %v4916_v18 }
 0x73a   :  { %v3045_v24 = vrot.slane %v2917_v12, %v4919_v29 }
 0x73b   :  { %v3028_v17 = vsel %vm1477_vm10, %v3027_v21, %v3023_v9 }
 0x73c   :  { %v2908_v4 = vpop.permute.xlu0 %2907 }
 0x73d   :  { %v2923_v56 = vpop.permute.xlu1 %2922  ;;  %v3032_v52 = vrot.slane %v2908_v4, %v4916_v18 }
 0x73e   :  { %v3054_v33 = vrot.slane %v2923_v56, %v4919_v29 }
 0x73f   :  { %v3037_v5 = vsel %vm1477_vm10, %v3036_v48, %v3032_v52 }
 0x740   :  { %v2914_v26 = vpop.permute.xlu0 %2913 }
 0x741   :  { %v4985_v14 = vpop.permute.xlu1 %2928  ;;  %v3041_v46 = vrot.slane %v2914_v26, %v4916_v18 }
 0x742   :  { %v3063_v4 = vrot.slane %v4985_v14, %v4919_v29 }
 0x743   :  { %v3046_v28 = vsel %vm1477_vm10, %v3045_v24, %v3041_v46 }
 0x744   :  { %v2920_v6 = vpop.permute.xlu0 %2919 }
 0x745   :  { %v4989_v2 = vpop.permute.xlu1 %2934  ;;  %v3050_v16 = vrot.slane %v2920_v6, %v4916_v18 }
 0x747   :  { %v3055_v49 = vsel %vm1477_vm10, %v3054_v33, %v3050_v16 }
 0x748   :  { %v4987_v53 = vpop.permute.xlu0 %2925 }
 0x749   :  { %v4993_v55 = vpop.permute.xlu1 %2940  ;;  %v3059_v30 = vrot.slane %v4987_v53, %v4916_v18  ;;  %v3072_v53 = vrot.slane %v4989_v2, %v4919_v29 }
 0x74b   :  { %v3064_v14 = vsel %vm1477_vm10, %v3063_v4, %v3059_v30 }
 0x74c   :  { %v4991_v40 = vpop.permute.xlu0 %2931 }
 0x74d   :  { %v2857_v57 = vpop.permute.xlu1 %2856  ;;  %v3068_v15 = vrot.slane %v4991_v40, %v4916_v18 }
 0x74e   :  { %v2955_v36 = vrot.slane %v2857_v57, %v4919_v29 }
 0x74f   :  { %v3073_v2 = vsel %vm1477_vm10, %v3072_v53, %v3068_v15 }
 0x750   :  { %v4995_v7 = vpop.permute.xlu0 %2937 }
 0x751   :  { %v3077_v12 = vrot.slane %v4995_v7, %v4916_v18  ;;  %v3081_v7 = vrot.slane %v4993_v55, %v4919_v29 }
 0x753   :  { %v3082_v9 = vsel %vm1477_vm10, %v3081_v7, %v3077_v12 }
 0x754   :  { %v2854_v59 = vpop.permute.xlu0 %2853 }
 0x755   :  { %v2951_v41 = vrot.slane %v2854_v59, %v4916_v18 }
 0x757   :  { %v2863_v1 = vpop.permute.xlu1 %2862  ;;  %v2956_v31 = vsel %vm1477_vm10, %v2955_v36, %v2951_v41 }
 0x758   :  { %v2860_v3 = vpop.permute.xlu0 %2859  ;;  %v2964_v43 = vrot.slane %v2863_v1, %v4919_v29 }
 0x759   :  { %v2960_v10 = vrot.slane %v2860_v3, %v4916_v18  ;;  %v3099_v3 = vsel %vm1614_vm7, %v3037_v5, %v3028_v17 }
 0x75b   :  { %v2965_v23 = vsel %vm1477_vm10, %v2964_v43, %v2960_v10 }
 0x75c   :  { %v2866_v25 = vpop.permute.xlu0 %2865  ;;  %v3092_v39 = vsel %vm1614_vm7, %v2965_v23, %v2956_v31 }
 0x75d   :  { %v2869_v34 = vpop.permute.xlu1 %2868  ;;  %v2969_v63 = vrot.slane %v2866_v25, %v4916_v18 }
 0x75e   :  { %v2973_v11 = vrot.slane %v2869_v34, %v4919_v29  ;;  %v3100_v34 = vsel %vm1616_vm5, %v3046_v28, %v3099_v3 }
 0x760   :  { %v2872_v38 = vpop.permute.xlu0 %2871  ;;  %v2974_v35 = vsel %vm1477_vm10, %v2973_v11, %v2969_v63 }
 0x761   :  { %v2978_v54 = vrot.slane %v2872_v38, %v4916_v18  ;;  %v3093_v13 = vsel %vm1616_vm5, %v2974_v35, %v3092_v39 }
 0x762   :  { %v2875_v50 = vpop.permute.xlu1 %2874 }
 0x763   :  { %v2982_v37 = vrot.slane %v2875_v50, %v4919_v29 }
 0x764   :  { %v2878_v47 = vpop.permute.xlu0 %2877 }
 0x765   :  { %v2987_v22 = vrot.slane %v2878_v47, %v4916_v18  ;;  %v2983_v27 = vsel %vm1477_vm10, %v2982_v37, %v2978_v54  ;;  %v3101_v47 = vsel %vm1618_vm8, %v3055_v49, %v3100_v34 }
 0x766   :  { %v2881_v62 = vpop.permute.xlu1 %2880  ;;  %v3094_v26 = vsel %vm1618_vm8, %v2983_v27, %v3093_v13  ;;  %v3102_v55 = vsel %vm1620_vm2, %v3064_v14, %v3101_v47 }
 0x767   :  { %v2991_v8 = vrot.slane %v2881_v62, %v4919_v29  ;;  %v3103_v48 = vsel %vm1622_vm11, %v3073_v2, %v3102_v55 }
 0x768   :  { %v2884_v60 = vpop.permute.xlu0 %2883  ;;  %v3104_v43 = vsel %vm1624_vm1, %v3082_v9, %v3103_v48 }
 0x769   :  { %v2996_v20 = vrot.slane %v2884_v60, %v4916_v18  ;;  %v2992_v32 = vsel %vm1477_vm10, %v2991_v8, %v2987_v22 }
 0x76a   :  { %v2887_v58 = vpop.permute.xlu1 %2886  ;;  %v3095_v40 = vsel %vm1620_vm2, %v2992_v32, %v3094_v26 }
 0x76b   :  { %v3000_v61 = vrot.slane %v2887_v58, %v4919_v29 }
 0x76c   :  { %v2890_v51 = vpop.permute.xlu0 %2889 }
 0x76d   :  { %v3005_v42 = vrot.slane %v2890_v51, %v4916_v18  ;;  %v3001_v44 = vsel %vm1477_vm10, %v3000_v61, %v2996_v20 }
 0x76e   :  { %v2893_v19 = vpop.permute.xlu1 %2892  ;;  %v3096_v1 = vsel %vm1622_vm11, %v3001_v44, %v3095_v40 }
 0x76f   :  { %v3009_v45 = vrot.slane %v2893_v19, %v4919_v29 }
 0x770   :  { %v2896_v0 = vpop.permute.xlu0 %2895 }
 0x771   :  { %v3010_v56 = vsel %vm1477_vm10, %v3009_v45, %v3005_v42  ;;  %v3014_v59 = vrot.slane %v2896_v0, %v4916_v18 }
 0x772   :  { %v2899_v6 = vpop.permute.xlu1 %2898  ;;  %v3097_v38 = vsel %vm1624_vm1, %v3010_v56, %v3096_v1 }
 0x773   :  { %v3018_v57 = vrot.slane %v2899_v6, %v4919_v29 }
 0x774   :  { %v2944_v25 = vpop.permute.xlu0 %2943 }
 0x775   :  { %v3019_v50 = vsel %vm1477_vm10, %v3018_v57, %v3014_v59  ;;  %v3086_v21 = vrot.slane %v2944_v25, %v4916_v18 }
 0x776   :  { %v3098_v62 = vsel %vm1626_vm12, %v3019_v50, %v3097_v38  ;;  %v2947_v52 = vpop.permute.xlu1 %2946 }
 0x777   :  { %3109 = vst.msk [vmem:[#allocation5 + $0x10] sm:$0xff] %vm5328_vm14, %v3098_v62  ;;  %v3090_v60 = vrot.slane %v2947_v52, %v4919_v29 }
 0x779   :  { %v3091_v17 = vsel %vm1477_vm10, %v3090_v60, %v3086_v21 }
 0x77a   :  { %v3105_v46 = vsel %vm1626_vm12, %v3091_v17, %v3104_v43 }
 0x77b   :  { %3110 = vst.msk [vmem:[#allocation5 + $0x18] sm:$0xff] %vm5329_vm15, %v3105_v46 }
 0x77c   :  { %3351 = shalt.err (!%p3348_p9)
}
 0x77d   :  { %s3369_s15 = smov 128   ;;  %s3370_s16 = smov 8  }
 0x77e   :  { %3122 = dma.vmem_to_hbm [thread:$0]  %s3117_s13, 512, %s5074_s4, [#allocation3], %s3369_s15, %s3369_s15, %s3370_s16  }
 0x77f   :  { %3362 = dma.done.wait [#allocation3], 512  }
 0x780   :  { %3363 = vsyncadd [#allocation3], 4294966784 }
 0x781   :  { %3126 = vsyncpa [#allocation3], 1 }
 0x782   :  { %3127 = vsyncpa [#allocation4], 1 }

</bundles_post_ra>
